<compile_context>
chip_gen: v7x
topology: tpu7x:2x2x1
jax: 0.10.0
libtpu: 0.0.40
codegen_flags: <defaults>
</compile_context>

<pallas_src>
import math

import jax
import jax.numpy as jnp
import numpy as np
from jax.experimental import pallas as pl
from jax.experimental.pallas import tpu as pltpu

# Max batch (lane) tile: wide unmasked stores, VMEM-safe on v7x (64 MiB), and
# B = 1024 in the demo still gives >= 2 grid steps for megacore.
TB_MAX = 512


def _round_up(v, m):
    return ((v + m - 1) // m) * m


def _term_list(l, l_in, step, x_keys):
    """Valid (l1, l2) pairs contributing to output degree l (mirrors the torch loops)."""
    terms = []
    for l1 in range(0, l_in + 1, step):
        for l2 in range(0, l_in + 1, step):
            if l1 not in x_keys or l2 not in x_keys:
                continue
            if l2 < l1:
                continue
            if abs(l2 - l1) > l or l > l1 + l2:
                continue
            terms.append((l1, l2))
    return terms


def _make_fused_kernel(n_x, pair_meta, compute_dtype):
    """Kernel over one batch tile.

    Refs (in order):
      x refs            : (rows_l, TB) f32, one per needed input degree
      W_all ref         : (R_pad, sum_r) compute_dtype (host-stacked CG weights)
      out ref           : (R_pad, TB) f32
      Y_all scratch ref : (sum_r, TB) compute_dtype

    pair_meta: list of (i1, i2, d1sq, r2, y_off) per unique (l1, l2) pair.
    """

    def kernel(*refs):
        x_refs = refs[:n_x]
        w_ref = refs[n_x]
        out_ref = refs[n_x + 1]
        y_ref = refs[n_x + 2]

        # Load each x block once (f32) and reuse across all coupling terms.
        xs = [r[...] for r in x_refs]

        # Build the concatenated Kronecker operand Y_all in the scratch.
        for (i1, i2, d1sq, r2, off) in pair_meta:
            x1 = xs[i1][:d1sq]            # true d1*d1 outer rows only (no zero rows)
            x2 = xs[i2]                   # inner operand, zero-padded to r2 (tile-aligned)
            tb = x2.shape[1]
            # Kronecker y[(a, b), n] = x1[a, n] * x2[b, n]; r2 is a multiple of
            # the sublane tile, so the reshape is a pure relabel.
            y = (x1[:, None, :] * x2[None, :, :]).reshape(d1sq * r2, tb)
            # Multiply in f32 (works on v5e's f32-only VALU), cast only for the
            # store (+ MXU) to halve the binding store/load bytes in bf16 mode.
            y_ref[off:off + d1sq * r2, :] = y.astype(compute_dtype)

        # One fused MXU matmul over the whole reduction axis, f32 accumulation.
        out_ref[...] = jnp.dot(w_ref[...], y_ref[...],
                               preferred_element_type=jnp.float32)

    return kernel


def quadratic_nonlinearity_pallas(x, wigner, l_in, l_out, step,
                                  compute_dtype=jnp.bfloat16):
    """Pallas implementation of QuadraticNonLinearity.forward.

    x: dict {l: (n, a, b, c, 2l+1, 2l+1)} float32
    wigner: dict {(l, l1, l2): array of shape (2l+1, 2l2+1, 2l1+1)}
            (== o3.wigner_3j(l1, l2, l).T, as registered by the torch module)
    compute_dtype: dtype of the Kronecker intermediate and CG weight matrix fed
            to the MXU.  Default bfloat16 (fast path; NOT bit-compatible with
            the torch module).  Use jnp.float32 for exact module semantics.
            Accumulation is always float32.
    """
    ref_shape = next(iter(x.values())).shape
    n, a, b, c = ref_shape[:4]
    B = n * a * b * c

    # Batch tile on the lane axis.
    B128 = _round_up(B, 128)
    TB = B128 if B128 <= TB_MAX else TB_MAX
    B_pad = _round_up(B, TB)

    x_keys = set(x.keys())
    out_degrees = []
    terms_per_l = {}
    for l in range(0, l_out + 1, step):
        terms = _term_list(l, l_in, step, x_keys)
        if terms:
            out_degrees.append(l)
            terms_per_l[l] = terms
    if not out_degrees:
        return {}

    # Fused output row layout: degree l occupies rows [row_off[l], row_off[l] + K^2).
    row_off = {}
    R_total = 0
    for l in out_degrees:
        row_off[l] = R_total
        R_total += (2 * l + 1) ** 2
    R_pad = _round_up(R_total, 8)   # unmasked sublane stores / aligned MXU M

    # Unique (l1, l2) pairs: one Kronecker per pair, shared across output degrees.
    pairs = sorted({t for l in out_degrees for t in terms_per_l[l]})
    needed = sorted({lv for p in pairs for lv in p})
    pos = {lv: i for i, lv in enumerate(needed)}

    # Inner-operand sublane padding: 16 for sub-32-bit compute dtypes (bf16
    # sublane tile), 8 for f32.  Outer operand is NOT padded (sliced in-kernel).
    inner_pad = 8 if np.dtype(compute_dtype).itemsize >= 4 else 16
    rows = {lv: _round_up((2 * lv + 1) ** 2, inner_pad) for lv in needed}

    # Host precompute of W_all: per pair, W[(k,m), (j,p,q,t)] = cg[k,j,q]*cg[m,p,t]
    # with sqrt(2) on both sides -> factor 2 folded in; rows stacked over output
    # degrees (zero-padded to R_pad), columns use true d1*d1 outer rows and
    # inner rows zero-padded to the tile-aligned Kronecker layout, then all
    # pairs concatenated along the reduction axis.
    # TODO(synk): real Wigner-3j tensors are sparse; zero-column pruning of W
    # beyond the structural padding removal is not applied here.
    pair_meta = []
    w_blocks = []
    y_off = 0
    for (l1, l2) in pairs:
        d1, d2 = 2 * l1 + 1, 2 * l2 + 1
        d1sq = d1 * d1
        r2 = rows[l2]
        wp = np.zeros((R_pad, d1sq, r2), np.float32)
        for l in out_degrees:
            if (l1, l2) not in terms_per_l[l]:
                continue
            K = 2 * l + 1
            cg = np.asarray(wigner[(l, l1, l2)], dtype=np.float32).reshape(K, d1, d2)
            if l1 != l2:
                cg = cg * math.sqrt(2.0)
            blk = np.einsum('kjq,mpt->kmjpqt', cg, cg).reshape(K * K, d1sq, d2 * d2)
            wp[row_off[l]:row_off[l] + K * K, :, :d2 * d2] += blk
        w_blocks.append(wp.reshape(R_pad, d1sq * r2))
        pair_meta.append((pos[l1], pos[l2], d1sq, r2, y_off))
        y_off += d1sq * r2
    sum_r = y_off
    w_all = jnp.asarray(np.concatenate(w_blocks, axis=1)).astype(compute_dtype)

    # Repack x[l] -> (rows[l], B_pad): flattened spectral dims on sublanes,
    # batch on lanes.  Kept f32 in HBM (multiply is f32 in-kernel).
    # TODO(synk): these transposes/pads are separate XLA relayouts; keeping x in
    # (d*d, B) layout upstream (and consuming the (R, B) slab downstream) would
    # remove HBM round trips that can dominate wall time at small sizes.
    x_flat = []
    for lv in needed:
        d = 2 * lv + 1
        v = jnp.transpose(x[lv].astype(jnp.float32), (4, 5, 0, 1, 2, 3)).reshape(d * d, B)
        v = jnp.pad(v, ((0, rows[lv] - d * d), (0, B_pad - B)))
        x_flat.append(v)

    kernel = _make_fused_kernel(len(needed), pair_meta, compute_dtype)

    in_specs = []
    for lv in needed:
        in_specs.append(pl.BlockSpec((rows[lv], TB), lambda i: (0, i)))
    # Full-array W block with constant index map -> DMA'd once, reused per tile.
    in_specs.append(pl.BlockSpec((R_pad, sum_r), lambda i: (0, 0)))

    res = pl.pallas_call(
        kernel,
        out_shape=jax.ShapeDtypeStruct((R_pad, B_pad), jnp.float32),
        grid=(B_pad // TB,),
        in_specs=in_specs,
        out_specs=pl.BlockSpec((R_pad, TB), lambda i: (0, i)),
        scratch_shapes=[pltpu.VMEM((sum_r, TB), compute_dtype)],
        compiler_params=pltpu.CompilerParams(
            dimension_semantics=("parallel",),
            vmem_limit_bytes=32 * 1024 * 1024),
    )(*x_flat, w_all)

    out = {}
    for l in out_degrees:
        K = 2 * l + 1
        blk = res[row_off[l]:row_off[l] + K * K, :B].reshape(K, K, n, a, b, c)
        out[l] = jnp.transpose(blk, (2, 3, 4, 5, 0, 1))
    return out


def quadratic_nonlinearity_ref(x, wigner, l_in, l_out, step):
    """Pure-JAX mirror of the PyTorch forward (for verification)."""
    rh = {}
    for l in range(0, l_out + 1, step):
        for l1 in range(0, l_in + 1, step):
            for l2 in range(0, l_in + 1, step):
                if l1 not in x or l2 not in x:
                    continue
                if l2 < l1:
                    continue
                if abs(l2 - l1) > l or l > l1 + l2:
                    continue
                cg_ = wigner[(l, l1, l2)]
                cg_r = jnp.reshape(cg_, (2 * l + 1, 2 * l1 + 1, 2 * l2 + 1))
                cg_l = jnp.swapaxes(cg_r, 1, 2)
                if l2 != l1:
                    cg_r = math.sqrt(2.0) * cg_r
                    cg_l = math.sqrt(2.0) * cg_l
                n, a, b, c, _, _ = x[l1].shape
                x_r = jnp.einsum('nabcij,klj->nabckli', x[l2], cg_r)
                x_r = jnp.reshape(x_r, (n, a, b, c, 2 * l + 1, -1))
                x_l = jnp.einsum('nabcji,klj->nabckil', x[l1], cg_l)
                x_l = jnp.reshape(x_l, (n, a, b, c, 2 * l + 1, -1))
                x_a = jnp.einsum('nabcki,nabcji->nabckj', x_l, x_r)
                rh[l] = x_a if l not in rh else rh[l] + x_a
    return rh


if __name__ == "__main__":
    l_in, l_out, symmetric = 2, 2, True
    step = 2 if symmetric else 1
    # batch n*a*b*c = 1024 -> TB = 512, two grid steps (exercises the parallel/megacore path)
    n, a, b, c = 2, 4, 16, 8

    key = jax.random.PRNGKey(0)
    x = {}
    for l in range(0, l_in + 1, step):
        key, sub = jax.random.split(key)
        d = 2 * l + 1
        x[l] = jax.random.normal(sub, (n, a, b, c, d, d), jnp.float32)

    # Deterministic synthetic Wigner-3j buffers with the exact shapes the module's
    # __init__ registers (o3.wigner_3j(l1, l2, l).T -> (2l+1, 2l2+1, 2l1+1)).
    # TODO(synk): exact e3nn o3.wigner_3j values are not reproduced; deterministic stand-ins only.
    wigner = {}
    wkey = jax.random.PRNGKey(42)
    for l in range(0, l_out + 1, step):
        for l1 in range(0, l_in + 1, step):
            for l2 in range(l1, l_in + 1, step):
                if abs(l2 - l1) > l or l > l1 + l2:
                    continue
                k = jax.random.fold_in(jax.random.fold_in(jax.random.fold_in(wkey, l), l1), l2)
                wigner[(l, l1, l2)] = 0.1 * jax.random.normal(
                    k, (2 * l + 1, 2 * l2 + 1, 2 * l1 + 1), jnp.float32)

    ref = quadratic_nonlinearity_ref(x, wigner, l_in, l_out, step)

    # Exact-semantics f32 path.
    out_f32 = quadratic_nonlinearity_pallas(x, wigner, l_in, l_out, step,
                                            compute_dtype=jnp.float32)
    out_f32 = {l: jax.block_until_ready(v) for l, v in out_f32.items()}
    for l in ref:
        np.testing.assert_allclose(np.asarray(out_f32[l]), np.asarray(ref[l]),
                                   rtol=1e-3, atol=1e-4)

    # Default fast path: bf16 Kronecker/CG operands on the MXU, f32 accumulation.
    out_bf16 = quadratic_nonlinearity_pallas(x, wigner, l_in, l_out, step)
    out_bf16 = {l: jax.block_until_ready(v) for l, v in out_bf16.items()}
    for l in ref:
        np.testing.assert_allclose(np.asarray(out_bf16[l]), np.asarray(ref[l]),
                                   rtol=5e-2, atol=1e-2)

    print("KERNEL_OK")
</pallas_src>

<mosaic_0001>
module attributes {stable_mosaic.version = 11 : i64} {
  func.func @kernel(%arg0: i32, %arg1: memref<8x512xf32, #tpu.memory_space<vmem>>, %arg2: memref<32x512xf32, #tpu.memory_space<vmem>>, %arg3: memref<32x840xf32, #tpu.memory_space<vmem>>, %arg4: memref<32x512xf32, #tpu.memory_space<vmem>>, %arg5: memref<840x512xf32, #tpu.memory_space<vmem>>) attributes {dimension_semantics = [#tpu.dimension_semantics<parallel>], iteration_bounds = array<i64: 2>, scalar_prefetch = 0 : i64, scratch_operands = 1 : i64, tpu.core_type = #tpu.core_type<tc>, window_params = [{transform_indices = @transform_0, window_bounds = array<i64: 8, 512>}, {transform_indices = @transform_1, window_bounds = array<i64: 32, 512>}, {pipeline_mode = #tpu.pipeline_mode<synchronous>, transform_indices = @transform_2, window_bounds = array<i64: 32, 840>}, {transform_indices = @transform_3, window_bounds = array<i64: 32, 512>}]} {
    %c0 = arith.constant 0 : index
    %c0_0 = arith.constant 0 : index
    %0 = vector.load %arg1[%c0, %c0_0] : memref<8x512xf32, #tpu.memory_space<vmem>>, vector<8x512xf32>
    %c0_1 = arith.constant 0 : index
    %c0_2 = arith.constant 0 : index
    %1 = vector.load %arg2[%c0_1, %c0_2] : memref<32x512xf32, #tpu.memory_space<vmem>>, vector<32x512xf32>
    %2 = vector.extract_strided_slice %0 {offsets = [0, 0], sizes = [1, 512], strides = [1, 1]} : vector<8x512xf32> to vector<1x512xf32>
    %3 = vector.shape_cast %2 : vector<1x512xf32> to vector<1x1x512xf32>
    %4 = vector.shape_cast %0 : vector<8x512xf32> to vector<1x8x512xf32>
    %5 = vector.broadcast %3 : vector<1x1x512xf32> to vector<1x8x512xf32>
    %6 = arith.mulf %5, %4 : vector<1x8x512xf32>
    %7 = vector.shape_cast %6 : vector<1x8x512xf32> to vector<8x512xf32>
    %c0_3 = arith.constant 0 : index
    %c0_4 = arith.constant 0 : index
    %8 = vector.load %arg5[%c0_3, %c0_4] : memref<840x512xf32, #tpu.memory_space<vmem>>, vector<8x512xf32>
    tpu.vector_store %arg5[%c0_3, %c0_4], %7 {strides = array<i32>} : memref<840x512xf32, #tpu.memory_space<vmem>>, vector<8x512xf32>,
    %9 = vector.extract_strided_slice %0 {offsets = [0, 0], sizes = [1, 512], strides = [1, 1]} : vector<8x512xf32> to vector<1x512xf32>
    %10 = vector.shape_cast %9 : vector<1x512xf32> to vector<1x1x512xf32>
    %11 = vector.shape_cast %1 : vector<32x512xf32> to vector<1x32x512xf32>
    %12 = vector.broadcast %10 : vector<1x1x512xf32> to vector<1x32x512xf32>
    %13 = arith.mulf %12, %11 : vector<1x32x512xf32>
    %14 = vector.shape_cast %13 : vector<1x32x512xf32> to vector<32x512xf32>
    %c8 = arith.constant 8 : index
    %c0_5 = arith.constant 0 : index
    %15 = vector.load %arg5[%c8, %c0_5] : memref<840x512xf32, #tpu.memory_space<vmem>>, vector<32x512xf32>
    tpu.vector_store %arg5[%c8, %c0_5], %14 {strides = array<i32>} : memref<840x512xf32, #tpu.memory_space<vmem>>, vector<32x512xf32>,
    %16 = vector.extract_strided_slice %1 {offsets = [0, 0], sizes = [25, 512], strides = [1, 1]} : vector<32x512xf32> to vector<25x512xf32>
    %17 = vector.shape_cast %16 : vector<25x512xf32> to vector<25x1x512xf32>
    %18 = vector.shape_cast %1 : vector<32x512xf32> to vector<1x32x512xf32>
    %19 = vector.broadcast %17 : vector<25x1x512xf32> to vector<25x32x512xf32>
    %20 = vector.broadcast %18 : vector<1x32x512xf32> to vector<25x32x512xf32>
    %21 = arith.mulf %19, %20 : vector<25x32x512xf32>
    %22 = vector.shape_cast %21 : vector<25x32x512xf32> to vector<800x512xf32>
    %c40 = arith.constant 40 : index
    %c0_6 = arith.constant 0 : index
    %23 = vector.load %arg5[%c40, %c0_6] : memref<840x512xf32, #tpu.memory_space<vmem>>, vector<800x512xf32>
    tpu.vector_store %arg5[%c40, %c0_6], %22 {strides = array<i32>} : memref<840x512xf32, #tpu.memory_space<vmem>>, vector<800x512xf32>,
    %c0_7 = arith.constant 0 : index
    %c0_8 = arith.constant 0 : index
    %24 = vector.load %arg3[%c0_7, %c0_8] : memref<32x840xf32, #tpu.memory_space<vmem>>, vector<32x840xf32>
    %c0_9 = arith.constant 0 : index
    %c0_10 = arith.constant 0 : index
    %25 = vector.load %arg5[%c0_9, %c0_10] : memref<840x512xf32, #tpu.memory_space<vmem>>, vector<840x512xf32>
    %cst = arith.constant dense<0.000000e+00> : vector<32x512xf32>
    %26 = tpu.matmul %24, %25, %cst {dimension_numbers = #tpu.dot_dimension_numbers<[1], [0], [0], [1], [0, 0, 1, 1], [], []>} : vector<32x840xf32>, vector<840x512xf32>, vector<32x512xf32> -> vector<32x512xf32>
    %c0_11 = arith.constant 0 : index
    %c0_12 = arith.constant 0 : index
    %27 = vector.load %arg4[%c0_11, %c0_12] : memref<32x512xf32, #tpu.memory_space<vmem>>, vector<32x512xf32>
    tpu.vector_store %arg4[%c0_11, %c0_12], %26 {strides = array<i32>} : memref<32x512xf32, #tpu.memory_space<vmem>>, vector<32x512xf32>,
    return
  }
  func.func @transform_0(%arg0: i32) -> (i32, i32) {
    %c0_i32 = arith.constant 0 : i32
    %c0_i32_0 = arith.constant 0 : i32
    return %c0_i32, %arg0 : i32, i32
  }
  func.func @transform_1(%arg0: i32) -> (i32, i32) {
    %c0_i32 = arith.constant 0 : i32
    %c0_i32_0 = arith.constant 0 : i32
    return %c0_i32, %arg0 : i32, i32
  }
  func.func @transform_2(%arg0: i32) -> (i32, i32) {
    %c0_i32 = arith.constant 0 : i32
    %c0_i32_0 = arith.constant 0 : i32
    %c0_i32_1 = arith.constant 0 : i32
    return %c0_i32, %c0_i32_0 : i32, i32
  }
  func.func @transform_3(%arg0: i32) -> (i32, i32) {
    %c0_i32 = arith.constant 0 : i32
    %c0_i32_0 = arith.constant 0 : i32
    return %c0_i32, %arg0 : i32, i32
  }
}

</mosaic_0001>

<bundles_post_ra>
// kernel: tpu_custom_call.1
= control target key start
LH: loop header
LB: loop body
LE: loop exit
PB: predicated region body
PF: predicated region fallthrough
CT: control target
= control target key end

     0   :  { %8 = vsyncpa [#allocation4], 0  ;;  %s5115_s0 = inlined_call_operand.hbm [shape: f32[8,1024], index: 0, kind: input, shape index: {}]   ;;  %s5116_s1 = inlined_call_operand.hbm [shape: f32[32,1024], index: 1, kind: input, shape index: {}]   ;;  %s5117_s2 = inlined_call_operand.hbm [shape: f32[32,840], index: 2, kind: input, shape index: {}]   ;;  %s5118_s3 = inlined_call_operand.hbm [shape: f32[32,1024], index: 3, kind: output, shape index: {}]  }
   0x1   :  { %10 = vsyncpa [#allocation4 + $0x1], 0 }
   0x2   :  { %11 = vsyncpa [#allocation7], 0 }
   0x3   :  { %13 = vsyncpa [#allocation7 + $0x1], 0 }
   0x4   :  { %14 = vsyncpa [#allocation5], 0 }
   0x5   :  { %16 = vsyncpa [#allocation5 + $0x1], 0  ;;  %s3969_s12 = smov 0   ;;  %s3971_s13 = smov 0  }
   0x6   :  { %s3973_s14 = smov 0   ;;  %s3975_s15 = smov 0  }
   0x7 LB: > { %s3990_s16 = sadd.s32 4294967295, %s3933_s15   ;;  %s3172_s17 = sadd.s32 4294967294, %s3933_s15   ;;  %s3933_s15 = sphi %s3975_s15, %s5140_s15   ;;  %s3929_s14 = sphi %s3973_s14, %s5139_s14   ;;  %s3925_s13 = sphi %s3971_s13, %s5138_s13   ;;  %s3921_s12 = sphi %s3969_s12, %s5137_s12  }
   0x8   : > { %p42_p0 = scmp.ne.s32.totalorder %s3925_s13, %s3921_s12  ;;  %p5119_p1 = scmp.eq.s32.totalorder %s3990_s16, 0 }
   0x9   : > { %p119_p3 = scmp.eq.s32.totalorder %s3172_s17, 1  ;;  %p3173_p5 = scmp.ge.s32.totalorder %s3933_s15, 1 }
   0xa   : > { %p3999_p4 = por %p5119_p1, %p42_p0  ;;  %p126_p7 = scmp.lt.s32.totalorder %s3933_s15, 3 }
   0xb   : > { %p4004_p6 = por %p119_p3, %p42_p0  ;;  %s3935_s21 = smov [#allocation8]  }
   0xc   : > { %s5122_s18 = scalar_select %p3999_p4, 1, 0 }
   0xd   : > { %s5123_s19 = scalar_select %p4004_p6, 1, 0 }
   0xe   : > { %p4009_p8 = pnand %p3173_p5, %p126_p7  ;;  %s138_s22 = sshll.u32 %s3935_s21, 4  ;;  %s4013_s22 = int_to_ptr.vmem [resolvable:$true] %s138_s22 }
   0xf   : > { %s4025_s24 = sadd.s32 1, %s3933_s15   ;;  %s29_s25 = sadd.s32 1, %s3929_s14 }
  0x10   : > { %s5124_s20 = scalar_select %p4009_p8, 1, 0 }
  0x11   : > { %p3677_p9 = pneg %p4009_p8  ;;  %s26_s26 = ssub.s32 %s3933_s15, %s4025_s24 }
  0x12   : > { %s3771_s29 = scalar_lea.hbm %s5117_s2, 3584 }
  0x13   : > { %p4020_p11 = pnand %p3677_p9, %p5119_p1  ;;  %p3772_p12 = scmp.ne.s32.totalorder %s5117_s2, %s3771_s29 }
  0x14   : > { %p3778_p5 = scmp.lt.u32.totalorder %s3771_s29, %s5117_s2 }
  0x15   : > { %p3773_p13 = pneg %p4020_p11 }
  0x17   : > { %p3774_p0 = pnand %p3773_p13, %p3772_p12 }
  0x19   : > { %p3775_p3 = pneg %p3774_p0 }
  0x1b   : > { %p3780_p7 = pnand %p3778_p5, %p3775_p3 }
  0x1d   : > { %3783 = shalt.err (!%p3780_p7)
}
  0x1e   : > { %s3784_s7 = scalar_lea.vmem %s4013_s22, 3584  ;;  %p3792_p2 = scmp.lt.s32.totalorder %s4013_s22, %s4013_s22 }
  0x1f   : > { %p3785_p9 = scmp.ne.s32.totalorder %s4013_s22, %s3784_s7  ;;  %p3793_p6 = scmp.lt.s32.totalorder %s3784_s7, %s3784_s7 }
  0x21   : > { %p3787_p10 = pnand %p3785_p9, %p3773_p13  ;;  %p3794_p4 = por %p3793_p6, %p3792_p2 }
  0x23   : > { %p3788_p1 = pneg %p3787_p10 }
  0x25   : > { %p3795_p8 = pnand %p3794_p4, %p3788_p1 }
  0x27   : > { %3798 = shalt.err (!%p3795_p8)
}
  0x28   : > { %s3936_s8 = smov 896   ;;  %s3937_s9 = smov 56  }
  0x29   : > { %3680 = dma.hbm_to_vmem [thread:$0]  (!%p4020_p11), %s5117_s2, 3584, %s4013_s22, [#allocation7], %s3936_s8, %s3936_s8, %s3937_s9  }
  0x2a   : > { %p27_p1 = scmp.eq.s32.totalorder %s26_s26, 0  ;;  %p36_p2 = scmp.ne.s32.totalorder %s3929_s14, %s3925_s13 }
  0x2b   : > { %p37_p4 = scmp.eq.s32.totalorder %s3933_s15, 0  ;;  %p3693_p6 = scmp.lt.s32.totalorder %s3933_s15, 2 }
  0x2c   : > { %s4056_s17 = scalar_select %p27_p1, %s3929_s14, %s29_s25  }
  0x2d   : > { %p38_p8 = por %p37_p4, %p36_p2  ;;  %p5126_p10 = scmp.eq.s32.totalorder %s3990_s16, 1 }
  0x2e   : > { %s4065_s27 = sand.u32 1, %s3929_s14   ;;  %s3200_s23 = sshll.u32 %s3933_s15, 9 }
  0x2f   : > { %p4060_p12 = por %p5126_p10, %p36_p2  ;;  %s3176_s28 = sshll.u32 %s4065_s27, 5 }
  0x30   : > { %s4074_s29 = scalar_lea.hbm %s5115_s0, %s3200_s23  ;;  %s156_s25 = scalar_lea.vmem [#allocation3], %s3176_s28 }
  0x31   : > { %s164_s30 = sshll.u32 %s156_s25, 4  ;;  %p4076_p11 = pnand %p3693_p6, %p38_p8  ;;  %s4080_s30 = int_to_ptr.vmem [resolvable:$true] %s164_s30 }
  0x32   : > { %s3179_s5 = sshll.u32 %s4065_s27, 7  ;;  %s153_s6 = scalar_lea.sflag [#allocation4], %s4065_s27 }
  0x33   : > { %s3799_s7 = scalar_lea.hbm %s4074_s29, 512  ;;  %p3801_p0 = pneg %p4076_p11 }
  0x34   : > { %p3800_p13 = scmp.ne.s32.totalorder %s4074_s29, %s3799_s7  ;;  %s3804_s10 = scalar_lea.hbm %s5115_s0, 1024 }
  0x35   : > { %p3805_p7 = scmp.lt.u32.totalorder %s4074_s29, %s5115_s0  ;;  %p3806_p9 = scmp.lt.u32.totalorder %s3804_s10, %s3799_s7 }
  0x36   : > { %p3802_p3 = pnand %p3801_p0, %p3800_p13  ;;  %p3808_p2 = scmp.lt.u32.totalorder %s3799_s7, %s4074_s29 }
  0x37   : > { %p3807_p1 = por %p3806_p9, %p3805_p7 }
  0x38   : > { %p3803_p5 = pneg %p3802_p3 }
  0x39   : > { %p3809_p4 = por %p3808_p2, %p3807_p1 }
  0x3b   : > { %p3810_p6 = pnand %p3809_p4, %p3803_p5 }
  0x3d   : > { %3813 = shalt.err (!%p3810_p6)
}
  0x3e   : > { %s3814_s22 = scalar_lea.vmem %s4080_s30, 512  ;;  %s3938_s26 = smov [#allocation3]  }
  0x3f   : > { %p3815_p8 = scmp.ne.s32.totalorder %s4080_s30, %s3814_s22  ;;  %s3819_s25 = sshll.u32 %s3938_s26, 4  ;;  %s3820_s25 = int_to_ptr.vmem [resolvable:$false] %s3819_s25 }
  0x40   : > { %s3821_s8 = scalar_lea.vmem %s3820_s25, 1024  ;;  %p3822_p3 = scmp.lt.s32.totalorder %s4080_s30, %s3820_s25 }
  0x41   : > { %p3817_p10 = pnand %p3815_p8, %p3801_p0  ;;  %p3823_p7 = scmp.lt.s32.totalorder %s3821_s8, %s3814_s22 }
  0x43   : > { %p3818_p13 = pneg %p3817_p10  ;;  %p3824_p9 = por %p3823_p7, %p3822_p3 }
  0x45   : > { %p3825_p1 = pnand %p3824_p9, %p3818_p13 }
  0x47   : > { %3828 = shalt.err (!%p3825_p1)
}
  0x48   : > { %3684 = dma.hbm_to_vmem [thread:$0]  (!%p4076_p11), %s4074_s29, 512, %s4080_s30, %s153_s6  }
  0x49   : > { %s4114_s10 = scalar_lea.hbm %s5116_s1, %s3200_s23  ;;  %s175_s11 = scalar_lea.vmem [#allocation6], %s3179_s5 }
  0x4a   : > { %s182_s28 = sshll.u32 %s175_s11, 4  ;;  %s171_s22 = sand.u32 1, %s3933_s15   ;;  %s4118_s28 = int_to_ptr.vmem [resolvable:$true] %s182_s28 }
  0x4b   : > { %s4121_s26 = scalar_lea.sflag [#allocation7], %s171_s22  ;;  %s3829_s25 = scalar_lea.hbm %s4114_s10, 2048 }
  0x4c   : > { %p3830_p5 = scmp.ne.s32.totalorder %s4114_s10, %s3829_s25  ;;  %s3834_s27 = scalar_lea.hbm %s5116_s1, 4096 }
  0x4d   : > { %p3835_p6 = scmp.lt.u32.totalorder %s4114_s10, %s5116_s1  ;;  %p3836_p8 = scmp.lt.u32.totalorder %s3834_s27, %s3829_s25 }
  0x4e   : > { %p3832_p2 = pnand %p3830_p5, %p3801_p0  ;;  %p3838_p13 = scmp.lt.u32.totalorder %s3829_s25, %s4114_s10 }
  0x4f   : > { %p3837_p10 = por %p3836_p8, %p3835_p6 }
  0x50   : > { %p3833_p4 = pneg %p3832_p2 }
  0x51   : > { %p3839_p3 = por %p3838_p13, %p3837_p10 }
  0x53   : > { %p3840_p7 = pnand %p3839_p3, %p3833_p4 }
  0x55   : > { %3843 = shalt.err (!%p3840_p7)
}
  0x56   : > { %s3844_s5 = scalar_lea.vmem %s4118_s28, 2048  ;;  %s3939_s8 = smov [#allocation6]  }
  0x57   : > { %p3845_p9 = scmp.ne.s32.totalorder %s4118_s28, %s3844_s5  ;;  %s3849_s7 = sshll.u32 %s3939_s8, 4  ;;  %s3850_s7 = int_to_ptr.vmem [resolvable:$false] %s3849_s7 }
  0x58   : > { %s3851_s9 = scalar_lea.vmem %s3850_s7, 4096  ;;  %p3852_p2 = scmp.lt.s32.totalorder %s4118_s28, %s3850_s7 }
  0x59   : > { %p3847_p1 = pnand %p3845_p9, %p3801_p0  ;;  %p3853_p6 = scmp.lt.s32.totalorder %s3851_s9, %s3844_s5 }
  0x5b   : > { %p3848_p5 = pneg %p3847_p1  ;;  %p3854_p8 = por %p3853_p6, %p3852_p2 }
  0x5d   : > { %p3855_p10 = pnand %p3854_p8, %p3848_p5 }
  0x5f   : > { %3858 = shalt.err (!%p3855_p10)
}
  0x60   : > { %s3940_s11 = smov 1024   ;;  %s3941_s22 = smov 512  }
  0x61   : > { %s3942_s25 = smov 32   ;;  %p5129_p0 = scmp.ne.s32.totalorder %s5124_s20, 0 }
  0x62   : > { %3687 = dma.hbm_to_vmem [thread:$0]  (!%p4076_p11), %s4114_s10, 2048, %s4118_s28, %s4121_s26, %s3940_s11, %s3941_s22, %s3942_s25  }
  0x63   : > { %194 = sbr.rel (%p5129_p0) target bundleno = 589 (0x24d), region = 32  ;;  %s4150_s23 = sand.u32 (!%p5129_p0), 1, %s3925_s13  }
  0x64   : > { %s3183_s29 = sshll.u32 (!%p5129_p0), %s4150_s23, 5  ;;  %s197_s27 = scalar_lea.sflag (!%p5129_p0), [#allocation4], %s4150_s23 }
  0x65   : > { %s200_s30 = scalar_lea.vmem (!%p5129_p0), [#allocation3], %s3183_s29  ;;  %p5130_p4 = scmp.ne.s32.totalorder (!%p5129_p0), %s5122_s18, 0 }
  0x6a   : > { %3904 = dma.done.wait (%p5130_p4), %s197_s27, 512  }
  0x6b   : > { %3906 = vsyncadd (%p5130_p4), %s197_s27, 4294966784  ;;  %s205_s20 = sand.u32 1, %s3990_s16   ;;  %s3184_s4 = sshll.u32 %s4150_s23, 7 }
  0x6c   : > { %s206_s10 = scalar_lea.sflag [#allocation7], %s205_s20  ;;  %s4162_s28 = scalar_lea.vmem [#allocation6], %s3184_s4 }
  0x6d   : > { %3908 = dma.done.wait (%p5130_p4), %s206_s10, 2048  }
  0x6e   : > { %3910 = vsyncadd (%p5130_p4), %s206_s10, 4294965248  ;;  %p5131_p11 = scmp.eq.s32.totalorder %s3990_s16, 0 }
  0x70   : > { %3912 = dma.done.wait (%p5131_p11), [#allocation7], 3584   ;;  %p5132_p13 = pmov %p5131_p11 }
  0x71   : > { %v264_v0 = vlaneseq  ;;  %v3943_v1 = vmov 1966171168   ;;  %v245_v6 = vld [vmem:[%s200_s30 + $0x8] sm:$0xff]  ;;  %v247_v8 = vld [vmem:[%s200_s30 + $0x18] sm:$0xff]  ;;  %v244_v11 = vld [vmem:[%s200_s30] sm:$0xff]  ;;  %vm2312_vm0 = vcmask 588800  }
  0x72   : > { %3914 = vsyncadd (%p5132_p13), [#allocation7], 4294963712  ;;  %v341_v2 = vunpack.c.l.s4 %v3943_v1  ;;  %v4178_v7 = vld [vmem:[%s4162_s28 + $0x8] sm:$0xff]  ;;  %v4183_v12 = vld [vmem:[%s4162_s28] sm:$0xff]  ;;  %s5046_s18 = scalar_lea.vmem [#allocation9], %s3184_s4  ;;  %s3202_s26 = sshll.u32 %s3990_s16, 9 }
  0x73   : > { %v4172_v3 = vshrl.u32 %v264_v0, 7  ;;  %v4186_v13 = vld [vmem:[%s4162_s28 + $0x18] sm:$0xff]  ;;  %v246_v15 = vld [vmem:[%s200_s30 + $0x10] sm:$0xff]  ;;  %v4190_v16 = vld [vmem:[%s4162_s28 + $0x28] sm:$0xff]  ;;  %v336_v17 = vcombine.low %v4183_v12, %v4178_v7  ;;  %v337_v19 = vcombine.high %v4183_v12, %v4178_v7  ;;  %s3067_s6 = sshll.u32 %s5046_s18, 4  ;;  %s5065_s7 = scalar_lea.hbm %s5118_s3, %s3202_s26  ;;  %s5067_s6 = int_to_ptr.vmem [resolvable:$true] %s3067_s6 }
  0x74   : > { %v342_v5 = vunpack.c.0.s8 %v341_v2  ;;  %v4202_v24 = vld [vmem:[%s4162_s28 + $0x48] sm:$0xff]  ;;  %v4205_v25 = vld [vmem:[%s4162_s28 + $0x38] sm:$0xff]  ;;  %v4214_v31 = vld [vmem:[%s4162_s28 + $0x20] sm:$0xff]  ;;  %s3054_s16 = scalar_lea.sflag [#allocation5], %s4150_s23  ;;  %s3859_s9 = scalar_lea.vmem %s5067_s6, 2048 }
  0x75   : > { %v4175_v4 = vsub.s32 0, %v4172_v3  ;;  %v4208_v26 = vld [vmem:[%s4162_s28 + $0x58] sm:$0xff]  ;;  %v4217_v32 = vld [vmem:[%s4162_s28 + $0x40] sm:$0xff]  ;;  %v4220_v35 = vld [vmem:[%s4162_s28 + $0x10] sm:$0xff]  ;;  %v4238_v48 = vsub.s32 1, %v4172_v3  ;;  %v4260_v2 = vsub.s32 3, %v4172_v3  ;;  %p3860_p3 = scmp.ne.s32.totalorder %s5067_s6, %s3859_s9 }
  0x76   : > { %v4195_v18 = vsub.s32 %v342_v5, %v4172_v3  ;;  %v4225_v38 = vld [vmem:[%s4162_s28 + $0x30] sm:$0xff]  ;;  %v4233_v44 = vld [vmem:[%s4162_s28 + $0x68] sm:$0xff]  ;;  %v4241_v49 = vld [vmem:[%s4162_s28 + $0x78] sm:$0xff]  ;;  %v338_v59 = vcombine.low %v4220_v35, %v4186_v13  ;;  %v339_v5 = vcombine.high %v4220_v35, %v4186_v13  ;;  %s3945_s11 = smov [#allocation9]  }
  0x77   : > { %v271_v9 = vrot.slane %v245_v6, %v4175_v4  ;;  %v279_v10 = vrot.slane %v247_v8, %v4175_v4  ;;  %v267_v14 = vrot.slane %v244_v11, %v4175_v4  ;;  %v275_v29 = vrot.slane %v246_v15, %v4175_v4  ;;  %v4228_v39 = vld [vmem:[%s4162_s28 + $0x50] sm:$0xff]  ;;  %v4244_v50 = vld [vmem:[%s4162_s28 + $0x60] sm:$0xff]  ;;  %v1865_v56 = vld [vmem:[#allocation8 + $0x8] sm:$0xff]  ;;  %p3861_p7 = pnand %p3860_p3, %p4060_p12  ;;  %s3863_s22 = sshll.u32 %s3945_s11, 4  ;;  %s3864_s22 = int_to_ptr.vmem [resolvable:$false] %s3863_s22 }
  0x78   : > { %v4247_v51 = vld [vmem:[%s4162_s28 + $0x70] sm:$0xff]  ;;  %v346_v60 = vrot.slane %v336_v17, %v4195_v18  ;;  %v360_v1 = vrot.slane %v338_v59, %v4195_v18  ;;  %2389 = vmatprep.mubr.f32.mxu0 %v1865_v56  ;;  %2745 = vmatprep.mubr.f32.mxu1 %v1865_v56  ;;  %v4277_v17 = vrot.slane %v339_v5, %v4195_v18  ;;  %s3865_s25 = scalar_lea.vmem %s3864_s22, 4096  ;;  %p3866_p1 = scmp.lt.s32.totalorder %s5067_s6, %s3864_s22 }
  0x79   : > { %v281_v20 = vmul.f32 %v271_v9, %v245_v6  ;;  %v289_v21 = vmul.f32 %v271_v9, %v4178_v7  ;;  %v283_v22 = vmul.f32 %v279_v10, %v247_v8  ;;  %v291_v23 = vmul.f32 %v279_v10, %v4186_v13  ;;  %p3862_p9 = pneg %p3861_p7  ;;  %p3867_p5 = scmp.lt.s32.totalorder %s3865_s25, %s3859_s9 }
  0x7a   : > { %v280_v27 = vmul.f32 %v267_v14, %v244_v11  ;;  %v288_v28 = vmul.f32 %v267_v14, %v4183_v12  ;;  %v293_v30 = vmul.f32 %v271_v9, %v4190_v16  ;;  %v297_v36 = vmul.f32 %v271_v9, %v4202_v24 }
  0x7b   : > { %v3203_v33 = vpack.c.bf16 %v289_v21, %v281_v20  ;;  %v3411_v34 = vpack.c.bf16 %v291_v23, %v283_v22  ;;  %v295_v37 = vmul.f32 %v279_v10, %v4205_v25  ;;  %v282_v41 = vmul.f32 %v275_v29, %v246_v15  ;;  %p3868_p2 = por %p3867_p5, %p3866_p1 }
  0x7c   : > { %v3205_v40 = vpack.c.bf16 %v288_v28, %v280_v27  ;;  %v290_v42 = vmul.f32 %v275_v29, %v4220_v35  ;;  %v299_v43 = vmul.f32 %v279_v10, %v4208_v26  ;;  %v3207_v45 = vpack.c.bf16 %v297_v36, %v293_v30 }
  0x7d   : > { %3204 = vmatprep.subr.bf16.mxu0 %v3203_v33  ;;  %3412 = vmatprep.subr.bf16.mxu1 %v3411_v34  ;;  %v292_v46 = vmul.f32 %v267_v14, %v4214_v31  ;;  %v296_v47 = vmul.f32 %v267_v14, %v4217_v32  ;;  %v294_v54 = vmul.f32 %v275_v29, %v4225_v38  ;;  %v4268_v8 = vsub.s32 2, %v4172_v3  ;;  %p3869_p6 = pnand %p3868_p2, %p3862_p9 }
  0x7e   : > { %3206 = vmatpush1.bf16.msra.mxu0 %v3205_v40  ;;  %v3413_v52 = vpack.c.bf16 %v290_v42, %v282_v41  ;;  %v3415_v53 = vpack.c.bf16 %v299_v43, %v295_v37  ;;  %v298_v55 = vmul.f32 %v275_v29, %v4228_v39  ;;  %v301_v58 = vmul.f32 %v271_v9, %v4233_v44 }
  0x7f   : > { %3208 = vmatprep.subr.bf16.mxu0 %v3207_v45  ;;  %v3209_v57 = vpack.c.bf16 %v296_v47, %v292_v46  ;;  %v303_v62 = vmul.f32 %v279_v10, %v4241_v49  ;;  %v300_v63 = vmul.f32 %v267_v14, %v4244_v50  ;;  %v302_v0 = vmul.f32 %v275_v29, %v4247_v51 }
  0x80   : > { %3414 = vmatpush1.bf16.msra.mxu1 %v3413_v52  ;;  %v3417_v61 = vpack.c.bf16 %v298_v55, %v294_v54  ;;  %v4265_v6 = vrot.slane %v337_v19, %v4195_v18  ;;  %v404_v9 = vcombine.low %v4214_v31, %v4190_v16  ;;  %v406_v10 = vcombine.low %v4225_v38, %v4205_v25 }
  0x81   : > { %3416 = vmatprep.subr.bf16.mxu1 %v3415_v53  ;;  %v405_v11 = vcombine.high %v4214_v31, %v4190_v16  ;;  %v368_v14 = vcombine.low %v346_v60, %v360_v1  ;;  %v369_v15 = vcombine.high %v346_v60, %v360_v1  ;;  %v407_v19 = vcombine.high %v4225_v38, %v4205_v25 }
  0x82   : > { %3210 = vmatpush1.bf16.msra.mxu0 %v3209_v57  ;;  %v4282_v3 = vrot.slane %v404_v9, %v4195_v18  ;;  %v4285_v20 = vrot.slane %v406_v10, %v4195_v18  ;;  %v370_v28 = vcombine.low %v4265_v6, %v4277_v17  ;;  %v371_v29 = vcombine.high %v4265_v6, %v4277_v17 }
  0x83   : > { %v4288_v21 = vrot.slane %v405_v11, %v4195_v18  ;;  %v4293_v23 = vrot.slane %v368_v14, %v4195_v18  ;;  %v4296_v27 = vrot.slane %v369_v15, %v4195_v18  ;;  %v4307_v34 = vrot.slane %v407_v19, %v4195_v18 }
  0x84   : > { %3418 = vmatpush1.bf16.msra.mxu1 %v3417_v61  ;;  %v436_v30 = vcombine.low %v4282_v3, %v4285_v20  ;;  %v437_v33 = vcombine.high %v4282_v3, %v4285_v20 }
  0x85   : > { %v571_v37 = vrot.slane %v4293_v23, %v4238_v48  ;;  %v579_v40 = vrot.slane %v4293_v23, %v4260_v2  ;;  %v567_v41 = vrot.slane %v4293_v23, %v4175_v4  ;;  %v575_v42 = vrot.slane %v4293_v23, %v4268_v8 }
  0x86   : > { %v587_v43 = vrot.slane %v4296_v27, %v4238_v48  ;;  %v595_v45 = vrot.slane %v4296_v27, %v4260_v2  ;;  %v583_v46 = vrot.slane %v4296_v27, %v4175_v4  ;;  %v4327_v47 = vrot.slane %v4296_v27, %v4268_v8 }
  0x87   : > { %v1065_v52 = vmul.f32 %v571_v37, %v4178_v7  ;;  %v1067_v53 = vmul.f32 %v579_v40, %v4186_v13  ;;  %v1064_v54 = vmul.f32 %v567_v41, %v4183_v12  ;;  %v1066_v55 = vmul.f32 %v575_v42, %v4220_v35 }
  0x88   : > { %v1069_v56 = vmul.f32 %v571_v37, %v4190_v16  ;;  %v1073_v57 = vmul.f32 %v571_v37, %v4202_v24  ;;  %v1071_v59 = vmul.f32 %v579_v40, %v4205_v25  ;;  %v1075_v60 = vmul.f32 %v579_v40, %v4208_v26 }
  0x89   : > { %v3211_v61 = vpack.c.bf16 %v1065_v52, %v301_v58  ;;  %v3419_v1 = vpack.c.bf16 %v1067_v53, %v303_v62  ;;  %v3213_v5 = vpack.c.bf16 %v1064_v54, %v300_v63  ;;  %v3421_v9 = vpack.c.bf16 %v1066_v55, %v302_v0 }
  0x8a   : > { %v3215_v10 = vpack.c.bf16 %v1073_v57, %v1069_v56  ;;  %v3423_v11 = vpack.c.bf16 %v1075_v60, %v1071_v59  ;;  %v1068_v14 = vmul.f32 %v567_v41, %v4214_v31  ;;  %v1072_v15 = vmul.f32 %v567_v41, %v4217_v32 }
  0x8b   : > { %3212 = vmatprep.subr.bf16.mxu0 %v3211_v61  ;;  %3420 = vmatprep.subr.bf16.mxu1 %v3419_v1  ;;  %v1070_v19 = vmul.f32 %v575_v42, %v4225_v38  ;;  %v1074_v36 = vmul.f32 %v575_v42, %v4228_v39  ;;  %v1077_v22 = vmul.f32 %v571_v37, %v4233_v44 }
  0x8c   : > { %3214 = vmatpush1.bf16.msra.mxu0 %v3213_v5  ;;  %3422 = vmatpush1.bf16.msra.mxu1 %v3421_v9  ;;  %v3217_v58 = vpack.c.bf16 %v1072_v15, %v1068_v14  ;;  %v1081_v62 = vmul.f32 %v587_v43, %v4178_v7  ;;  %v1079_v63 = vmul.f32 %v579_v40, %v4241_v49 }
  0x8d   : > { %3216 = vmatprep.subr.bf16.mxu0 %v3215_v10  ;;  %3424 = vmatprep.subr.bf16.mxu1 %v3423_v11  ;;  %v3425_v0 = vpack.c.bf16 %v1074_v36, %v1070_v19  ;;  %v1083_v52 = vmul.f32 %v595_v45, %v4186_v13  ;;  %v1076_v53 = vmul.f32 %v567_v41, %v4244_v50 }
  0x8e   : > { %v3219_v54 = vpack.c.bf16 %v1081_v62, %v1077_v22  ;;  %v1080_v55 = vmul.f32 %v583_v46, %v4183_v12  ;;  %v1078_v56 = vmul.f32 %v575_v42, %v4247_v51  ;;  %v1082_v37 = vmul.f32 %v4327_v47, %v4220_v35 }
  0x8f   : > { %v3427_v57 = vpack.c.bf16 %v1083_v52, %v1079_v63  ;;  %v1085_v59 = vmul.f32 %v587_v43, %v4190_v16  ;;  %v1089_v40 = vmul.f32 %v587_v43, %v4202_v24  ;;  %v1087_v60 = vmul.f32 %v595_v45, %v4205_v25 }
  0x90   : > { %3218 = vmatpush1.bf16.msra.mxu0 %v3217_v58  ;;  %3426 = vmatpush1.bf16.msra.mxu1 %v3425_v0  ;;  %v3221_v36 = vpack.c.bf16 %v1080_v55, %v1076_v53  ;;  %v3429_v61 = vpack.c.bf16 %v1082_v37, %v1078_v56  ;;  %v1091_v22 = vmul.f32 %v595_v45, %v4208_v26 }
  0x91   : > { %3220 = vmatprep.subr.bf16.mxu0 %v3219_v54  ;;  %3428 = vmatprep.subr.bf16.mxu1 %v3427_v57  ;;  %v3223_v41 = vpack.c.bf16 %v1089_v40, %v1085_v59  ;;  %v1084_v42 = vmul.f32 %v583_v46, %v4214_v31  ;;  %v1088_v1 = vmul.f32 %v583_v46, %v4217_v32 }
  0x92   : > { %v3431_v5 = vpack.c.bf16 %v1091_v22, %v1087_v60  ;;  %v1086_v9 = vmul.f32 %v4327_v47, %v4225_v38  ;;  %v1090_v10 = vmul.f32 %v4327_v47, %v4228_v39  ;;  %v400_v11 = vcombine.high %v4293_v23, %v4293_v23 }
  0x93   : > { %v3225_v14 = vpack.c.bf16 %v1088_v1, %v1084_v42  ;;  %v1093_v15 = vmul.f32 %v587_v43, %v4233_v44  ;;  %v1095_v19 = vmul.f32 %v595_v45, %v4241_v49  ;;  %v1092_v58 = vmul.f32 %v583_v46, %v4244_v50 }
  0x94   : > { %3222 = vmatpush1.bf16.msra.mxu0 %v3221_v36  ;;  %3430 = vmatpush1.bf16.msra.mxu1 %v3429_v61  ;;  %v3433_v62 = vpack.c.bf16 %v1090_v10, %v1086_v9  ;;  %v603_v63 = vrot.slane %v400_v11, %v4238_v48  ;;  %v611_v0 = vrot.slane %v400_v11, %v4260_v2 }
  0x95   : > { %3224 = vmatprep.subr.bf16.mxu0 %v3223_v41  ;;  %3432 = vmatprep.subr.bf16.mxu1 %v3431_v5  ;;  %v599_v52 = vrot.slane %v400_v11, %v4175_v4  ;;  %v607_v23 = vrot.slane %v400_v11, %v4268_v8  ;;  %v1094_v43 = vmul.f32 %v4327_v47, %v4247_v51 }
  0x96   : > { %v1097_v45 = vmul.f32 %v603_v63, %v4178_v7  ;;  %v1099_v46 = vmul.f32 %v611_v0, %v4186_v13  ;;  %v1101_v53 = vmul.f32 %v603_v63, %v4190_v16  ;;  %v1105_v54 = vmul.f32 %v603_v63, %v4202_v24 }
  0x97   : > { %v1096_v55 = vmul.f32 %v599_v52, %v4183_v12  ;;  %v1098_v56 = vmul.f32 %v607_v23, %v4220_v35  ;;  %v1103_v37 = vmul.f32 %v611_v0, %v4205_v25  ;;  %v1107_v57 = vmul.f32 %v611_v0, %v4208_v26 }
  0x98   : > { %3226 = vmatpush1.bf16.msra.mxu0 %v3225_v14  ;;  %3434 = vmatpush1.bf16.msra.mxu1 %v3433_v62  ;;  %v3227_v59 = vpack.c.bf16 %v1097_v45, %v1093_v15  ;;  %v3435_v47 = vpack.c.bf16 %v1099_v46, %v1095_v19  ;;  %v3231_v40 = vpack.c.bf16 %v1105_v54, %v1101_v53 }
  0x99   : > { %v3229_v60 = vpack.c.bf16 %v1096_v55, %v1092_v58  ;;  %v3437_v36 = vpack.c.bf16 %v1098_v56, %v1094_v43  ;;  %v3439_v61 = vpack.c.bf16 %v1107_v57, %v1103_v37  ;;  %v1100_v22 = vmul.f32 %v599_v52, %v4214_v31 }
  0x9a   : > { %3228 = vmatprep.subr.bf16.mxu0 %v3227_v59  ;;  %3436 = vmatprep.subr.bf16.mxu1 %v3435_v47  ;;  %v1104_v41 = vmul.f32 %v599_v52, %v4217_v32  ;;  %v1102_v42 = vmul.f32 %v607_v23, %v4225_v38  ;;  %v1106_v1 = vmul.f32 %v607_v23, %v4228_v39 }
  0x9b   : > { %v402_v5 = vcombine.high %v4296_v27, %v4296_v27  ;;  %v1109_v9 = vmul.f32 %v603_v63, %v4233_v44  ;;  %v1111_v10 = vmul.f32 %v611_v0, %v4241_v49  ;;  %v1108_v11 = vmul.f32 %v599_v52, %v4244_v50 }
  0x9c   : > { %3230 = vmatpush1.bf16.msra.mxu0 %v3229_v60  ;;  %3438 = vmatpush1.bf16.msra.mxu1 %v3437_v36  ;;  %v3233_v14 = vpack.c.bf16 %v1104_v41, %v1100_v22  ;;  %v3441_v15 = vpack.c.bf16 %v1106_v1, %v1102_v42  ;;  %v1110_v19 = vmul.f32 %v607_v23, %v4247_v51 }
  0x9d   : > { %3232 = vmatprep.subr.bf16.mxu0 %v3231_v40  ;;  %3440 = vmatprep.subr.bf16.mxu1 %v3439_v61  ;;  %v619_v58 = vrot.slane %v402_v5, %v4238_v48  ;;  %v627_v62 = vrot.slane %v402_v5, %v4260_v2  ;;  %v615_v27 = vrot.slane %v402_v5, %v4175_v4 }
  0x9e   : > { %v623_v63 = vrot.slane %v402_v5, %v4268_v8  ;;  %v4397_v0 = vrot.slane %v370_v28, %v4195_v18  ;;  %v4403_v52 = vrot.slane %v371_v29, %v4195_v18  ;;  %v4409_v23 = vrot.slane %v436_v30, %v4195_v18 }
  0x9f   : > { %v1113_v43 = vmul.f32 %v619_v58, %v4178_v7  ;;  %v1115_v45 = vmul.f32 %v627_v62, %v4186_v13  ;;  %v1112_v46 = vmul.f32 %v615_v27, %v4183_v12  ;;  %v1117_v28 = vmul.f32 %v619_v58, %v4190_v16 }
  0xa0   : > { %3234 = vmatpush1.bf16.msra.mxu0 %v3233_v14  ;;  %3442 = vmatpush1.bf16.msra.mxu1 %v3441_v15  ;;  %v1114_v6 = vmul.f32 %v623_v63, %v4220_v35  ;;  %v1121_v17 = vmul.f32 %v619_v58, %v4202_v24  ;;  %v1119_v29 = vmul.f32 %v627_v62, %v4205_v25 }
  0xa1   : > { %v3235_v53 = vpack.c.bf16 %v1113_v43, %v1109_v9  ;;  %v3443_v54 = vpack.c.bf16 %v1115_v45, %v1111_v10  ;;  %v3237_v30 = vpack.c.bf16 %v1112_v46, %v1108_v11  ;;  %v1123_v55 = vmul.f32 %v627_v62, %v4208_v26 }
  0xa2   : > { %v3445_v56 = vpack.c.bf16 %v1114_v6, %v1110_v19  ;;  %v3239_v37 = vpack.c.bf16 %v1121_v17, %v1117_v28  ;;  %v1116_v57 = vmul.f32 %v615_v27, %v4214_v31  ;;  %v1120_v59 = vmul.f32 %v615_v27, %v4217_v32 }
  0xa3   : > { %3236 = vmatprep.subr.bf16.mxu0 %v3235_v53  ;;  %3444 = vmatprep.subr.bf16.mxu1 %v3443_v54  ;;  %v3447_v47 = vpack.c.bf16 %v1123_v55, %v1119_v29  ;;  %v1118_v40 = vmul.f32 %v623_v63, %v4225_v38  ;;  %v1122_v60 = vmul.f32 %v623_v63, %v4228_v39 }
  0xa4   : > { %3238 = vmatpush1.bf16.msra.mxu0 %v3237_v30  ;;  %3446 = vmatpush1.bf16.msra.mxu1 %v3445_v56  ;;  %v3241_v36 = vpack.c.bf16 %v1120_v59, %v1116_v57  ;;  %v635_v61 = vrot.slane %v4397_v0, %v4238_v48  ;;  %v1125_v22 = vmul.f32 %v619_v58, %v4233_v44 }
  0xa5   : > { %3240 = vmatprep.subr.bf16.mxu0 %v3239_v37  ;;  %3448 = vmatprep.subr.bf16.mxu1 %v3447_v47  ;;  %v3449_v41 = vpack.c.bf16 %v1122_v60, %v1118_v40  ;;  %v643_v42 = vrot.slane %v4397_v0, %v4260_v2  ;;  %v1127_v1 = vmul.f32 %v627_v62, %v4241_v49 }
  0xa6   : > { %v1129_v5 = vmul.f32 %v635_v61, %v4178_v7  ;;  %v631_v9 = vrot.slane %v4397_v0, %v4175_v4  ;;  %v1124_v10 = vmul.f32 %v615_v27, %v4244_v50  ;;  %v639_v11 = vrot.slane %v4397_v0, %v4268_v8 }
  0xa7   : > { %v1131_v14 = vmul.f32 %v643_v42, %v4186_v13  ;;  %v1126_v15 = vmul.f32 %v623_v63, %v4247_v51  ;;  %v1133_v19 = vmul.f32 %v635_v61, %v4190_v16  ;;  %v1137_v58 = vmul.f32 %v635_v61, %v4202_v24 }
  0xa8   : > { %3242 = vmatpush1.bf16.msra.mxu0 %v3241_v36  ;;  %3450 = vmatpush1.bf16.msra.mxu1 %v3449_v41  ;;  %v3243_v62 = vpack.c.bf16 %v1129_v5, %v1125_v22  ;;  %v1128_v43 = vmul.f32 %v631_v9, %v4183_v12  ;;  %v1130_v45 = vmul.f32 %v639_v11, %v4220_v35 }
  0xa9   : > { %v3451_v46 = vpack.c.bf16 %v1131_v14, %v1127_v1  ;;  %v3247_v27 = vpack.c.bf16 %v1137_v58, %v1133_v19  ;;  %v1135_v28 = vmul.f32 %v643_v42, %v4205_v25  ;;  %v1139_v6 = vmul.f32 %v643_v42, %v4208_v26 }
  0xaa   : > { %3244 = vmatprep.subr.bf16.mxu0 %v3243_v62  ;;  %v3245_v17 = vpack.c.bf16 %v1128_v43, %v1124_v10  ;;  %v3453_v63 = vpack.c.bf16 %v1130_v45, %v1126_v15  ;;  %v1132_v29 = vmul.f32 %v631_v9, %v4214_v31  ;;  %v1136_v53 = vmul.f32 %v631_v9, %v4217_v32 }
  0xab   : > { %3452 = vmatprep.subr.bf16.mxu1 %v3451_v46  ;;  %v3455_v54 = vpack.c.bf16 %v1139_v6, %v1135_v28  ;;  %v1134_v30 = vmul.f32 %v639_v11, %v4225_v38  ;;  %v1138_v55 = vmul.f32 %v639_v11, %v4228_v39  ;;  %v651_v56 = vrot.slane %v4403_v52, %v4238_v48 }
  0xac   : > { %3246 = vmatpush1.bf16.msra.mxu0 %v3245_v17  ;;  %3454 = vmatpush1.bf16.msra.mxu1 %v3453_v63  ;;  %v3249_v37 = vpack.c.bf16 %v1136_v53, %v1132_v29  ;;  %v1141_v57 = vmul.f32 %v635_v61, %v4233_v44  ;;  %v659_v59 = vrot.slane %v4403_v52, %v4260_v2 }
  0xad   : > { %3248 = vmatprep.subr.bf16.mxu0 %v3247_v27  ;;  %3456 = vmatprep.subr.bf16.mxu1 %v3455_v54  ;;  %v3457_v47 = vpack.c.bf16 %v1138_v55, %v1134_v30  ;;  %v1145_v40 = vmul.f32 %v651_v56, %v4178_v7  ;;  %v1143_v60 = vmul.f32 %v643_v42, %v4241_v49 }
  0xae   : > { %v1147_v36 = vmul.f32 %v659_v59, %v4186_v13  ;;  %v647_v22 = vrot.slane %v4403_v52, %v4175_v4  ;;  %v1140_v41 = vmul.f32 %v631_v9, %v4244_v50  ;;  %v655_v61 = vrot.slane %v4403_v52, %v4268_v8 }
  0xaf   : > { %v3251_v1 = vpack.c.bf16 %v1145_v40, %v1141_v57  ;;  %v1142_v5 = vmul.f32 %v639_v11, %v4247_v51  ;;  %v1149_v10 = vmul.f32 %v651_v56, %v4190_v16  ;;  %v1153_v14 = vmul.f32 %v651_v56, %v4202_v24 }
  0xb0   : > { %3250 = vmatpush1.bf16.msra.mxu0 %v3249_v37  ;;  %3458 = vmatpush1.bf16.msra.mxu1 %v3457_v47  ;;  %v3459_v42 = vpack.c.bf16 %v1147_v36, %v1143_v60  ;;  %v1144_v15 = vmul.f32 %v647_v22, %v4183_v12  ;;  %v1146_v19 = vmul.f32 %v655_v61, %v4220_v35 }
  0xb1   : > { %3252 = vmatprep.subr.bf16.mxu0 %v3251_v1  ;;  %v3255_v58 = vpack.c.bf16 %v1153_v14, %v1149_v10  ;;  %v1151_v9 = vmul.f32 %v659_v59, %v4205_v25  ;;  %v1155_v62 = vmul.f32 %v659_v59, %v4208_v26  ;;  %v1148_v43 = vmul.f32 %v647_v22, %v4214_v31 }
  0xb2   : > { %3460 = vmatprep.subr.bf16.mxu1 %v3459_v42  ;;  %v3253_v11 = vpack.c.bf16 %v1144_v15, %v1140_v41  ;;  %v3461_v45 = vpack.c.bf16 %v1146_v19, %v1142_v5  ;;  %v1152_v46 = vmul.f32 %v647_v22, %v4217_v32  ;;  %v1150_v27 = vmul.f32 %v655_v61, %v4225_v38 }
  0xb3   : > { %v3463_v28 = vpack.c.bf16 %v1155_v62, %v1151_v9  ;;  %v1154_v6 = vmul.f32 %v655_v61, %v4228_v39  ;;  %v401_v17 = vcombine.high %v4397_v0, %v4397_v0  ;;  %v1157_v63 = vmul.f32 %v651_v56, %v4233_v44 }
  0xb4   : > { %3254 = vmatpush1.bf16.msra.mxu0 %v3253_v11  ;;  %3462 = vmatpush1.bf16.msra.mxu1 %v3461_v45  ;;  %v3257_v29 = vpack.c.bf16 %v1152_v46, %v1148_v43  ;;  %v1159_v53 = vmul.f32 %v659_v59, %v4241_v49  ;;  %v1156_v54 = vmul.f32 %v647_v22, %v4244_v50 }
  0xb5   : > { %3256 = vmatprep.subr.bf16.mxu0 %v3255_v58  ;;  %3464 = vmatprep.subr.bf16.mxu1 %v3463_v28  ;;  %v3465_v30 = vpack.c.bf16 %v1154_v6, %v1150_v27  ;;  %v667_v55 = vrot.slane %v401_v17, %v4238_v48  ;;  %v675_v37 = vrot.slane %v401_v17, %v4260_v2 }
  0xb6   : > { %v663_v57 = vrot.slane %v401_v17, %v4175_v4  ;;  %v671_v0 = vrot.slane %v401_v17, %v4268_v8  ;;  %v1158_v56 = vmul.f32 %v655_v61, %v4247_v51  ;;  %v403_v47 = vcombine.high %v4403_v52, %v4403_v52 }
  0xb7   : > { %v1161_v59 = vmul.f32 %v667_v55, %v4178_v7  ;;  %v1163_v40 = vmul.f32 %v675_v37, %v4186_v13  ;;  %v1165_v60 = vmul.f32 %v667_v55, %v4190_v16  ;;  %v1169_v36 = vmul.f32 %v667_v55, %v4202_v24 }
  0xb8   : > { %3258 = vmatpush1.bf16.msra.mxu0 %v3257_v29  ;;  %3466 = vmatpush1.bf16.msra.mxu1 %v3465_v30  ;;  %v1160_v22 = vmul.f32 %v663_v57, %v4183_v12  ;;  %v1162_v41 = vmul.f32 %v671_v0, %v4220_v35  ;;  %v1167_v1 = vmul.f32 %v675_v37, %v4205_v25 }
  0xb9   : > { %v3259_v61 = vpack.c.bf16 %v1161_v59, %v1157_v63  ;;  %v3467_v5 = vpack.c.bf16 %v1163_v40, %v1159_v53  ;;  %v3263_v10 = vpack.c.bf16 %v1169_v36, %v1165_v60  ;;  %v1171_v52 = vmul.f32 %v675_v37, %v4208_v26 }
  0xba   : > { %v3261_v14 = vpack.c.bf16 %v1160_v22, %v1156_v54  ;;  %v3469_v42 = vpack.c.bf16 %v1162_v41, %v1158_v56  ;;  %v1164_v15 = vmul.f32 %v663_v57, %v4214_v31  ;;  %v1168_v19 = vmul.f32 %v663_v57, %v4217_v32 }
  0xbb   : > { %3260 = vmatprep.subr.bf16.mxu0 %v3259_v61  ;;  %3468 = vmatprep.subr.bf16.mxu1 %v3467_v5  ;;  %v3471_v58 = vpack.c.bf16 %v1171_v52, %v1167_v1  ;;  %v1166_v9 = vmul.f32 %v671_v0, %v4225_v38  ;;  %v1170_v62 = vmul.f32 %v671_v0, %v4228_v39 }
  0xbc   : > { %3262 = vmatpush1.bf16.msra.mxu0 %v3261_v14  ;;  %3470 = vmatpush1.bf16.msra.mxu1 %v3469_v42  ;;  %v3265_v43 = vpack.c.bf16 %v1168_v19, %v1164_v15  ;;  %v683_v11 = vrot.slane %v403_v47, %v4238_v48  ;;  %v1173_v45 = vmul.f32 %v667_v55, %v4233_v44  ;;  %v1872_v15 = vld [vmem:[#allocation8 + $0x40] sm:$0xff] }
  0xbd   : > { %3264 = vmatprep.subr.bf16.mxu0 %v3263_v10  ;;  %3472 = vmatprep.subr.bf16.mxu1 %v3471_v58  ;;  %v3473_v46 = vpack.c.bf16 %v1170_v62, %v1166_v9  ;;  %v691_v27 = vrot.slane %v403_v47, %v4260_v2  ;;  %v1175_v28 = vmul.f32 %v675_v37, %v4241_v49  ;;  %v1864_v37 = vld [vmem:[#allocation8] sm:$0xff] }
  0xbe   : > { %v1177_v6 = vmul.f32 %v683_v11, %v4178_v7  ;;  %v679_v17 = vrot.slane %v403_v47, %v4175_v4  ;;  %v1172_v63 = vmul.f32 %v663_v57, %v4244_v50  ;;  %v687_v29 = vrot.slane %v403_v47, %v4268_v8 }
  0xbf   : > { %v1179_v53 = vmul.f32 %v691_v27, %v4186_v13  ;;  %v1174_v54 = vmul.f32 %v671_v0, %v4247_v51  ;;  %v1181_v30 = vmul.f32 %v683_v11, %v4190_v16  ;;  %v1185_v55 = vmul.f32 %v683_v11, %v4202_v24 }
  0xc0   : > { %3266 = vmatpush1.bf16.msra.mxu0 %v3265_v43  ;;  %3474 = vmatpush1.bf16.msra.mxu1 %v3473_v46  ;;  %v3267_v56 = vpack.c.bf16 %v1177_v6, %v1173_v45  ;;  %v1176_v59 = vmul.f32 %v679_v17, %v4183_v12  ;;  %v1178_v40 = vmul.f32 %v687_v29, %v4220_v35 }
  0xc1   : > { %v3475_v60 = vpack.c.bf16 %v1179_v53, %v1175_v28  ;;  %v3271_v57 = vpack.c.bf16 %v1185_v55, %v1181_v30  ;;  %v1183_v47 = vmul.f32 %v691_v27, %v4205_v25  ;;  %v1187_v36 = vmul.f32 %v691_v27, %v4208_v26 }
  0xc2   : > { %3268 = vmatprep.subr.bf16.mxu0 %v3267_v56  ;;  %v3269_v0 = vpack.c.bf16 %v1176_v59, %v1172_v63  ;;  %v3477_v22 = vpack.c.bf16 %v1178_v40, %v1174_v54  ;;  %v1180_v41 = vmul.f32 %v679_v17, %v4214_v31  ;;  %v1184_v1 = vmul.f32 %v679_v17, %v4217_v32 }
  0xc3   : > { %3476 = vmatprep.subr.bf16.mxu1 %v3475_v60  ;;  %2390 = vmatmul.mubr.f32.vlgmr.msra.gmra.mrb[0].mxu0 %v1864_v37  ;;  %v3479_v61 = vpack.c.bf16 %v1187_v36, %v1183_v47  ;;  %v1182_v5 = vmul.f32 %v687_v29, %v4225_v38  ;;  %v1186_v10 = vmul.f32 %v687_v29, %v4228_v39 }
  0xc4   : > { %3270 = vmatpush1.bf16.msra.mxu0 %v3269_v0  ;;  %2746 = vmatmul.mubr.f32.vlgmr.msra.gmra.mrb[0].mxu1 %v1864_v37  ;;  %v3273_v52 = vpack.c.bf16 %v1184_v1, %v1180_v41  ;;  %v699_v14 = vrot.slane %v4409_v23, %v4238_v48  ;;  %v1189_v42 = vmul.f32 %v683_v11, %v4233_v44 }
  0xc5   : > { %3478 = vmatpush1.bf16.msra.mxu1 %v3477_v22  ;;  %3272 = vmatprep.subr.bf16.mxu0 %v3271_v57  ;;  %v3481_v19 = vpack.c.bf16 %v1186_v10, %v1182_v5  ;;  %v707_v58 = vrot.slane %v4409_v23, %v4260_v2  ;;  %v1191_v9 = vmul.f32 %v691_v27, %v4241_v49 }
  0xc6   : > { %3480 = vmatprep.subr.bf16.mxu1 %v3479_v61  ;;  %v1193_v62 = vmul.f32 %v699_v14, %v4178_v7  ;;  %v695_v43 = vrot.slane %v4409_v23, %v4175_v4  ;;  %v1188_v45 = vmul.f32 %v679_v17, %v4244_v50  ;;  %v703_v11 = vrot.slane %v4409_v23, %v4268_v8 }
  0xc7   : > { %v1195_v46 = vmul.f32 %v707_v58, %v4186_v13  ;;  %v1190_v28 = vmul.f32 %v687_v29, %v4247_v51  ;;  %v1197_v6 = vmul.f32 %v699_v14, %v4190_v16  ;;  %v1201_v63 = vmul.f32 %v699_v14, %v4202_v24  ;;  %2395 = vmatprep.mubr.f32.mxu0 %v1872_v15 }
  0xc8   : > { %3274 = vmatpush1.bf16.msra.mxu0 %v3273_v52  ;;  %v3275_v27 = vpack.c.bf16 %v1193_v62, %v1189_v42  ;;  %v1192_v53 = vmul.f32 %v695_v43, %v4183_v12  ;;  %v1194_v54 = vmul.f32 %v703_v11, %v4220_v35  ;;  %v1199_v17 = vmul.f32 %v707_v58, %v4205_v25  ;;  %v1871_v62 = vld [vmem:[#allocation8 + $0x38] sm:$0xff] }
  0xc9   : > { %3482 = vmatpush1.bf16.msra.mxu1 %v3481_v19  ;;  %v3483_v30 = vpack.c.bf16 %v1195_v46, %v1191_v9  ;;  %v3279_v55 = vpack.c.bf16 %v1201_v63, %v1197_v6  ;;  %v1203_v56 = vmul.f32 %v707_v58, %v4208_v26  ;;  %v1196_v29 = vmul.f32 %v695_v43, %v4214_v31 }
  0xca   : > { %3276 = vmatprep.subr.bf16.mxu0 %v3275_v27  ;;  %v3277_v37 = vpack.c.bf16 %v1192_v53, %v1188_v45  ;;  %v3485_v59 = vpack.c.bf16 %v1194_v54, %v1190_v28  ;;  %v1200_v40 = vmul.f32 %v695_v43, %v4217_v32  ;;  %v1198_v60 = vmul.f32 %v703_v11, %v4225_v38 }
  0xcb   : > { %3484 = vmatprep.subr.bf16.mxu1 %v3483_v30  ;;  %v3487_v57 = vpack.c.bf16 %v1203_v56, %v1199_v17  ;;  %v1202_v47 = vmul.f32 %v703_v11, %v4228_v39  ;;  %v460_v36 = vrot.slane %v437_v33, %v4195_v18  ;;  %v1205_v0 = vmul.f32 %v699_v14, %v4233_v44 }
  0xcc   : > { %3278 = vmatpush1.bf16.msra.mxu0 %v3277_v37  ;;  %v3281_v22 = vpack.c.bf16 %v1200_v40, %v1196_v29  ;;  %v1207_v41 = vmul.f32 %v707_v58, %v4241_v49  ;;  %v1204_v1 = vmul.f32 %v695_v43, %v4244_v50  ;;  %v1206_v61 = vmul.f32 %v703_v11, %v4247_v51 }
  0xcd   : > { %3486 = vmatpush1.bf16.msra.mxu1 %v3485_v59  ;;  %3280 = vmatprep.subr.bf16.mxu0 %v3279_v55  ;;  %v3489_v5 = vpack.c.bf16 %v1202_v47, %v1198_v60  ;;  %v715_v10 = vrot.slane %v460_v36, %v4238_v48  ;;  %v723_v52 = vrot.slane %v460_v36, %v4260_v2 }
  0xce   : > { %3488 = vmatprep.subr.bf16.mxu1 %v3487_v57  ;;  %v711_v3 = vrot.slane %v460_v36, %v4175_v4  ;;  %v719_v20 = vrot.slane %v460_v36, %v4268_v8  ;;  %v468_v33 = vcombine.high %v4409_v23, %v4409_v23  ;;  %v4553_v14 = vcombine.high %v460_v36, %v460_v36 }
  0xcf   : > { %v1209_v42 = vmul.f32 %v715_v10, %v4178_v7  ;;  %v1211_v19 = vmul.f32 %v723_v52, %v4186_v13  ;;  %v1213_v58 = vmul.f32 %v715_v10, %v4190_v16  ;;  %v1217_v9 = vmul.f32 %v715_v10, %v4202_v24  ;;  %2751 = vmatprep.mubr.f32.mxu1 %v1872_v15 }
  0xd0   : > { %3282 = vmatpush1.bf16.msra.mxu0 %v3281_v22  ;;  %v1208_v43 = vmul.f32 %v711_v3, %v4183_v12  ;;  %v1210_v45 = vmul.f32 %v719_v20, %v4220_v35  ;;  %v1215_v11 = vmul.f32 %v723_v52, %v4205_v25  ;;  %v1219_v23 = vmul.f32 %v723_v52, %v4208_v26 }
  0xd1   : > { %3490 = vmatpush1.bf16.msra.mxu1 %v3489_v5  ;;  %v3283_v46 = vpack.c.bf16 %v1209_v42, %v1205_v0  ;;  %v3491_v28 = vpack.c.bf16 %v1211_v19, %v1207_v41  ;;  %v3287_v6 = vpack.c.bf16 %v1217_v9, %v1213_v58  ;;  %v1212_v63 = vmul.f32 %v711_v3, %v4214_v31  ;;  %v1879_v19 = vld [vmem:[#allocation8 + $0x78] sm:$0xff] }
  0xd2   : > { %v3285_v27 = vpack.c.bf16 %v1208_v43, %v1204_v1  ;;  %v3493_v53 = vpack.c.bf16 %v1210_v45, %v1206_v61  ;;  %v3495_v54 = vpack.c.bf16 %v1219_v23, %v1215_v11  ;;  %v1216_v15 = vmul.f32 %v711_v3, %v4217_v32  ;;  %2396 = vmatmul.mubr.f32.gmra.mrb[2].mxu0 %v1871_v62 }
  0xd3   : > { %3284 = vmatprep.subr.bf16.mxu0 %v3283_v46  ;;  %3492 = vmatprep.subr.bf16.mxu1 %v3491_v28  ;;  %v1214_v17 = vmul.f32 %v719_v20, %v4225_v38  ;;  %v1218_v30 = vmul.f32 %v719_v20, %v4228_v39  ;;  %v731_v55 = vrot.slane %v468_v33, %v4238_v48 }
  0xd4   : > { %3286 = vmatpush1.bf16.msra.mxu0 %v3285_v27  ;;  %v3289_v56 = vpack.c.bf16 %v1216_v15, %v1212_v63  ;;  %v1221_v29 = vmul.f32 %v715_v10, %v4233_v44  ;;  %v739_v37 = vrot.slane %v468_v33, %v4260_v2  ;;  %v1223_v59 = vmul.f32 %v723_v52, %v4241_v49 }
  0xd5   : > { %3494 = vmatpush1.bf16.msra.mxu1 %v3493_v53  ;;  %3288 = vmatprep.subr.bf16.mxu0 %v3287_v6  ;;  %v3497_v40 = vpack.c.bf16 %v1218_v30, %v1214_v17  ;;  %v1225_v60 = vmul.f32 %v731_v55, %v4178_v7  ;;  %v727_v57 = vrot.slane %v468_v33, %v4175_v4 }
  0xd6   : > { %3496 = vmatprep.subr.bf16.mxu1 %v3495_v54  ;;  %v1227_v47 = vmul.f32 %v739_v37, %v4186_v13  ;;  %v1220_v36 = vmul.f32 %v711_v3, %v4244_v50  ;;  %v735_v0 = vrot.slane %v468_v33, %v4268_v8  ;;  %v1222_v22 = vmul.f32 %v719_v20, %v4247_v51 }
  0xd7   : > { %v3291_v41 = vpack.c.bf16 %v1225_v60, %v1221_v29  ;;  %v1224_v1 = vmul.f32 %v727_v57, %v4183_v12  ;;  %v1229_v61 = vmul.f32 %v731_v55, %v4190_v16  ;;  %v1233_v5 = vmul.f32 %v731_v55, %v4202_v24  ;;  %2752 = vmatmul.mubr.f32.gmra.mrb[2].mxu1 %v1871_v62 }
  0xd8   : > { %3290 = vmatpush1.bf16.msra.mxu0 %v3289_v56  ;;  %v3499_v10 = vpack.c.bf16 %v1227_v47, %v1223_v59  ;;  %v1226_v52 = vmul.f32 %v735_v0, %v4220_v35  ;;  %v1231_v42 = vmul.f32 %v739_v37, %v4205_v25  ;;  %v1235_v3 = vmul.f32 %v739_v37, %v4208_v26 }
  0xd9   : > { %3498 = vmatpush1.bf16.msra.mxu1 %v3497_v40  ;;  %3292 = vmatprep.subr.bf16.mxu0 %v3291_v41  ;;  %v3293_v20 = vpack.c.bf16 %v1224_v1, %v1220_v36  ;;  %v3295_v33 = vpack.c.bf16 %v1233_v5, %v1229_v61  ;;  %v1228_v58 = vmul.f32 %v727_v57, %v4214_v31 }
  0xda   : > { %3500 = vmatprep.subr.bf16.mxu1 %v3499_v10  ;;  %v3501_v9 = vpack.c.bf16 %v1226_v52, %v1222_v22  ;;  %v3503_v43 = vpack.c.bf16 %v1235_v3, %v1231_v42  ;;  %v1232_v62 = vmul.f32 %v727_v57, %v4217_v32  ;;  %v1230_v45 = vmul.f32 %v735_v0, %v4225_v38  ;;  %v1886_v42 = vld [vmem:[#allocation8 + $0xb0] sm:$0xff] }
  0xdb   : > { %v1234_v11 = vmul.f32 %v735_v0, %v4228_v39  ;;  %v747_v23 = vrot.slane %v4553_v14, %v4238_v48  ;;  %v1237_v46 = vmul.f32 %v731_v55, %v4233_v44  ;;  %v755_v28 = vrot.slane %v4553_v14, %v4260_v2  ;;  %2401 = vmatprep.mubr.f32.mxu0 %v1879_v19 }
  0xdc   : > { %3294 = vmatpush1.bf16.msra.mxu0 %v3293_v20  ;;  %v3297_v6 = vpack.c.bf16 %v1232_v62, %v1228_v58  ;;  %v1239_v63 = vmul.f32 %v739_v37, %v4241_v49  ;;  %v743_v27 = vrot.slane %v4553_v14, %v4175_v4  ;;  %v1236_v53 = vmul.f32 %v727_v57, %v4244_v50  ;;  %v4654_v58 = vld [vmem:[%s4162_s28 + $0x8] sm:$0xff] }
  0xdd   : > { %3502 = vmatpush1.bf16.msra.mxu1 %v3501_v9  ;;  %3296 = vmatprep.subr.bf16.mxu0 %v3295_v33  ;;  %v3505_v54 = vpack.c.bf16 %v1234_v11, %v1230_v45  ;;  %v1241_v15 = vmul.f32 %v747_v23, %v4178_v7  ;;  %v1243_v17 = vmul.f32 %v755_v28, %v4186_v13  ;;  %v4662_v45 = vld [vmem:[%s4162_s28] sm:$0xff] }
  0xde   : > { %3504 = vmatprep.subr.bf16.mxu1 %v3503_v43  ;;  %v1240_v30 = vmul.f32 %v743_v27, %v4183_v12  ;;  %v751_v55 = vrot.slane %v4553_v14, %v4268_v8  ;;  %v1238_v56 = vmul.f32 %v735_v0, %v4247_v51  ;;  %v1245_v29 = vmul.f32 %v747_v23, %v4190_v16  ;;  %v1878_v14 = vld [vmem:[#allocation8 + $0x70] sm:$0xff]  ;;  %v4658_v43 = vld [vmem:[%s4162_s28 + $0x18] sm:$0xff] }
  0xdf   : > { %v3299_v37 = vpack.c.bf16 %v1241_v15, %v1237_v46  ;;  %v3507_v59 = vpack.c.bf16 %v1243_v17, %v1239_v63  ;;  %v1249_v40 = vmul.f32 %v747_v23, %v4202_v24  ;;  %v1247_v60 = vmul.f32 %v755_v28, %v4205_v25  ;;  %2757 = vmatprep.mubr.f32.mxu1 %v1879_v19  ;;  %v4680_v15 = vld [vmem:[%s4162_s28 + $0x58] sm:$0xff] }
  0xe0   : > { %3298 = vmatpush1.bf16.msra.mxu0 %v3297_v6  ;;  %v3301_v7 = vpack.c.bf16 %v1240_v30, %v1236_v53  ;;  %v1242_v13 = vmul.f32 %v751_v55, %v4220_v35  ;;  %v1251_v12 = vmul.f32 %v755_v28, %v4208_v26  ;;  %v1244_v57 = vmul.f32 %v743_v27, %v4214_v31  ;;  %v4671_v6 = vld [vmem:[%s4162_s28 + $0x28] sm:$0xff]  ;;  %v4676_v53 = vld [vmem:[%s4162_s28 + $0x38] sm:$0xff] }
  0xe1   : > { %3506 = vmatpush1.bf16.msra.mxu1 %v3505_v54  ;;  %3300 = vmatprep.subr.bf16.mxu0 %v3299_v37  ;;  %v3303_v47 = vpack.c.bf16 %v1249_v40, %v1245_v29  ;;  %v1248_v16 = vmul.f32 %v743_v27, %v4217_v32  ;;  %v1246_v36 = vmul.f32 %v751_v55, %v4225_v38  ;;  %v4684_v40 = vld [vmem:[%s4162_s28 + $0x20] sm:$0xff] }
  0xe2   : > { %3508 = vmatprep.subr.bf16.mxu1 %v3507_v59  ;;  %v3509_v0 = vpack.c.bf16 %v1242_v13, %v1238_v56  ;;  %v3511_v25 = vpack.c.bf16 %v1251_v12, %v1247_v60  ;;  %v1250_v22 = vmul.f32 %v751_v55, %v4228_v39  ;;  %v438_v35 = vcombine.low %v4288_v21, %v4307_v34  ;;  %v4689_v13 = vld [vmem:[%s4162_s28 + $0x30] sm:$0xff] }
  0xe3   : > { %v3305_v41 = vpack.c.bf16 %v1248_v16, %v1244_v57  ;;  %v1253_v31 = vmul.f32 %v747_v23, %v4233_v44  ;;  %v1255_v1 = vmul.f32 %v755_v28, %v4241_v49  ;;  %v1252_v61 = vmul.f32 %v743_v27, %v4244_v50  ;;  %2402 = vmatmul.mubr.f32.gmra.mrb[4].mxu0 %v1878_v14  ;;  %v4666_v23 = vld [vmem:[%s4162_s28 + $0x10] sm:$0xff]  ;;  %v1885_v28 = vld [vmem:[#allocation8 + $0xa8] sm:$0xff] }
  0xe4   : > { %3302 = vmatpush1.bf16.msra.mxu0 %v3301_v7  ;;  %v3513_v38 = vpack.c.bf16 %v1250_v22, %v1246_v36  ;;  %v453_v5 = vrot.slane %v438_v35, %v4195_v18  ;;  %v1254_v10 = vmul.f32 %v751_v55, %v4247_v51  ;;  %v439_v52 = vcombine.high %v4288_v21, %v4307_v34  ;;  %v4633_v51 = vld [vmem:[%s4162_s28 + $0x48] sm:$0xff]  ;;  %v4636_v21 = vld [vmem:[%s4162_s28 + $0x40] sm:$0xff]  ;;  %v4694_v57 = vld [vmem:[%s4162_s28 + $0x50] sm:$0xff] }
  0xe5   : > { %3510 = vmatpush1.bf16.msra.mxu1 %v3509_v0  ;;  %3304 = vmatprep.subr.bf16.mxu0 %v3303_v47  ;;  %v5133_v44 = vcombine.low %v4217_v32, %v4202_v24  ;;  %v5134_v50 = vcombine.low %v4228_v39, %v4208_v26  ;;  %v473_v34 = vcombine.high %v4636_v21, %v4633_v51  ;;  %v4701_v36 = vld [vmem:[%s4162_s28 + $0x68] sm:$0xff]  ;;  %v1867_v22 = vld [vmem:[#allocation8 + $0x18] sm:$0xff] }
  0xe6   : > { %3512 = vmatprep.subr.bf16.mxu1 %v3511_v25  ;;  %v763_v24 = vrot.slane %v453_v5, %v4238_v48  ;;  %v771_v32 = vrot.slane %v453_v5, %v4260_v2  ;;  %v759_v26 = vrot.slane %v453_v5, %v4175_v4  ;;  %v4644_v39 = vrot.slane %v453_v5, %v4268_v8 }
  0xe7   : > { %v4624_v49 = vrot.slane %v5133_v44, %v4195_v18  ;;  %v4630_v3 = vrot.slane %v5134_v50, %v4195_v18  ;;  %v4647_v19 = vrot.slane %v439_v52, %v4195_v18  ;;  %v4649_v20 = vcombine.high %v453_v5, %v453_v5  ;;  %2758 = vmatmul.mubr.f32.gmra.mrb[4].mxu1 %v1878_v14  ;;  %v4715_v5 = vld [vmem:[%s4162_s28 + $0x60] sm:$0xff]  ;;  %v4721_v44 = vld [vmem:[%s4162_s28 + $0x70] sm:$0xff] }
  0xe8   : > { %2407 = vmatprep.mubr.f32.mxu0 %v1886_v42  ;;  %3306 = vmatpush1.bf16.msra.mxu0 %v3305_v41  ;;  %v1257_v9 = vmul.f32 %v4654_v58, %v763_v24  ;;  %v1259_v62 = vmul.f32 %v4658_v43, %v771_v32  ;;  %v1256_v11 = vmul.f32 %v4662_v45, %v759_v26 }
  0xe9   : > { %v504_v33 = vcombine.low %v4624_v49, %v4630_v3  ;;  %v1258_v46 = vmul.f32 %v4666_v23, %v4644_v39  ;;  %3514 = vmatpush1.bf16.msra.mxu1 %v3513_v38  ;;  %v1261_v63 = vmul.f32 %v4671_v6, %v763_v24  ;;  %v1265_v27 = vmul.f32 %v4633_v51, %v763_v24 }
  0xea   : > { %v1263_v54 = vmul.f32 %v4676_v53, %v771_v32  ;;  %v1267_v17 = vmul.f32 %v4680_v15, %v771_v32  ;;  %v3307_v30 = vpack.c.bf16 %v1257_v9, %v1253_v31  ;;  %v3515_v55 = vpack.c.bf16 %v1259_v62, %v1255_v1  ;;  %2763 = vmatprep.mubr.f32.mxu1 %v1886_v42  ;;  %v4708_v31 = vld [vmem:[%s4162_s28 + $0x78] sm:$0xff] }
  0xeb   : > { %v3309_v56 = vpack.c.bf16 %v1256_v11, %v1252_v61  ;;  %v3517_v29 = vpack.c.bf16 %v1258_v46, %v1254_v10  ;;  %v3311_v37 = vpack.c.bf16 %v1265_v27, %v1261_v63  ;;  %v1260_v60 = vmul.f32 %v4684_v40, %v759_v26  ;;  %2408 = vmatmul.mubr.f32.gmra.mrb[6].mxu0 %v1885_v28 }
  0xec   : > { %v3519_v59 = vpack.c.bf16 %v1267_v17, %v1263_v54  ;;  %v1264_v7 = vmul.f32 %v4636_v21, %v759_v26  ;;  %3308 = vmatprep.subr.bf16.mxu0 %v3307_v30  ;;  %3516 = vmatprep.subr.bf16.mxu1 %v3515_v55  ;;  %v1262_v12 = vmul.f32 %v4689_v13, %v4644_v39 }
  0xed   : > { %v1266_v14 = vmul.f32 %v4694_v57, %v4644_v39  ;;  %v779_v47 = vrot.slane %v4647_v19, %v4238_v48  ;;  %3310 = vmatpush1.bf16.msra.mxu0 %v3309_v56  ;;  %3518 = vmatpush1.bf16.msra.mxu1 %v3517_v29  ;;  %v1269_v0 = vmul.f32 %v4701_v36, %v763_v24 }
  0xee   : > { %v3313_v16 = vpack.c.bf16 %v1264_v7, %v1260_v60  ;;  %v787_v25 = vrot.slane %v4647_v19, %v4260_v2  ;;  %3312 = vmatprep.subr.bf16.mxu0 %v3311_v37  ;;  %3520 = vmatprep.subr.bf16.mxu1 %v3519_v59  ;;  %v1271_v1 = vmul.f32 %v4708_v31, %v771_v32 }
  0xef   : > { %v3521_v35 = vpack.c.bf16 %v1266_v14, %v1262_v12  ;;  %v1273_v41 = vmul.f32 %v4654_v58, %v779_v47  ;;  %v775_v38 = vrot.slane %v4647_v19, %v4175_v4  ;;  %v1268_v10 = vmul.f32 %v4715_v5, %v759_v26  ;;  %2764 = vmatmul.mubr.f32.gmra.mrb[6].mxu1 %v1885_v28 }
  0xf0   : > { %v1275_v61 = vmul.f32 %v4658_v43, %v787_v25  ;;  %v783_v52 = vrot.slane %v4647_v19, %v4268_v8  ;;  %v1270_v50 = vmul.f32 %v4721_v44, %v4644_v39  ;;  %v1277_v24 = vmul.f32 %v4671_v6, %v779_v47  ;;  %2478 = vmatprep.mubr.f32.mxu0 %v1867_v22 }
  0xf1   : > { %v3315_v42 = vpack.c.bf16 %v1273_v41, %v1269_v0  ;;  %v1281_v32 = vmul.f32 %v4633_v51, %v779_v47  ;;  %3314 = vmatpush1.bf16.msra.mxu0 %v3313_v16  ;;  %3522 = vmatpush1.bf16.msra.mxu1 %v3521_v35  ;;  %v1272_v26 = vmul.f32 %v4662_v45, %v775_v38 }
  0xf2   : > { %v3523_v9 = vpack.c.bf16 %v1275_v61, %v1271_v1  ;;  %v1274_v62 = vmul.f32 %v4666_v23, %v783_v52  ;;  %v1279_v46 = vmul.f32 %v4676_v53, %v787_v25  ;;  %v1283_v28 = vmul.f32 %v4680_v15, %v787_v25  ;;  %2834 = vmatprep.mubr.f32.mxu1 %v1867_v22 }
  0xf3   : > { %3316 = vmatprep.subr.bf16.mxu0 %v3315_v42  ;;  %v3319_v11 = vpack.c.bf16 %v1281_v32, %v1277_v24  ;;  %v1276_v39 = vmul.f32 %v4684_v40, %v775_v38  ;;  %v3317_v63 = vpack.c.bf16 %v1272_v26, %v1268_v10  ;;  %v1280_v54 = vmul.f32 %v4636_v21, %v775_v38 }
  0xf4   : > { %3524 = vmatprep.subr.bf16.mxu1 %v3523_v9  ;;  %v3525_v27 = vpack.c.bf16 %v1274_v62, %v1270_v50  ;;  %v1278_v17 = vmul.f32 %v4689_v13, %v783_v52  ;;  %v3527_v30 = vpack.c.bf16 %v1283_v28, %v1279_v46  ;;  %v1282_v55 = vmul.f32 %v4694_v57, %v783_v52 }
  0xf5   : > { %v795_v56 = vrot.slane %v4649_v20, %v4238_v48  ;;  %v1285_v29 = vmul.f32 %v4701_v36, %v779_v47  ;;  %3318 = vmatpush1.bf16.msra.mxu0 %v3317_v63  ;;  %v3321_v37 = vpack.c.bf16 %v1280_v54, %v1276_v39  ;;  %v803_v59 = vrot.slane %v4649_v20, %v4260_v2 }
  0xf6   : > { %3526 = vmatpush1.bf16.msra.mxu1 %v3525_v27  ;;  %v1287_v60 = vmul.f32 %v4708_v31, %v787_v25  ;;  %3320 = vmatprep.subr.bf16.mxu0 %v3319_v11  ;;  %v3529_v7 = vpack.c.bf16 %v1282_v55, %v1278_v17  ;;  %v791_v14 = vrot.slane %v4649_v20, %v4175_v4 }
  0xf7   : > { %3528 = vmatprep.subr.bf16.mxu1 %v3527_v30  ;;  %v1289_v12 = vmul.f32 %v4654_v58, %v795_v56  ;;  %v1291_v16 = vmul.f32 %v4658_v43, %v803_v59  ;;  %v1284_v47 = vmul.f32 %v4715_v5, %v775_v38  ;;  %v799_v0 = vrot.slane %v4649_v20, %v4268_v8 }
  0xf8   : > { %v1286_v22 = vmul.f32 %v4721_v44, %v783_v52  ;;  %v1288_v25 = vmul.f32 %v4662_v45, %v791_v14  ;;  %v1293_v41 = vmul.f32 %v4671_v6, %v795_v56  ;;  %v1297_v1 = vmul.f32 %v4633_v51, %v795_v56 }
  0xf9   : > { %v3323_v35 = vpack.c.bf16 %v1289_v12, %v1285_v29  ;;  %3322 = vmatpush1.bf16.msra.mxu0 %v3321_v37  ;;  %v3531_v61 = vpack.c.bf16 %v1291_v16, %v1287_v60  ;;  %v1290_v10 = vmul.f32 %v4666_v23, %v799_v0  ;;  %v1295_v42 = vmul.f32 %v4676_v53, %v803_v59 }
  0xfa   : > { %3530 = vmatpush1.bf16.msra.mxu1 %v3529_v7  ;;  %v3325_v38 = vpack.c.bf16 %v1288_v25, %v1284_v47  ;;  %v3327_v50 = vpack.c.bf16 %v1297_v1, %v1293_v41  ;;  %v1299_v20 = vmul.f32 %v4680_v15, %v803_v59  ;;  %v1292_v52 = vmul.f32 %v4684_v40, %v791_v14 }
  0xfb   : > { %3324 = vmatprep.subr.bf16.mxu0 %v3323_v35  ;;  %3532 = vmatprep.subr.bf16.mxu1 %v3531_v61  ;;  %v3533_v24 = vpack.c.bf16 %v1290_v10, %v1286_v22  ;;  %v1296_v32 = vmul.f32 %v4636_v21, %v791_v14  ;;  %v1294_v9 = vmul.f32 %v4689_v13, %v799_v0 }
  0xfc   : > { %v1298_v26 = vmul.f32 %v4694_v57, %v799_v0  ;;  %v3535_v62 = vpack.c.bf16 %v1299_v20, %v1295_v42  ;;  %v471_v11 = vcombine.high %v4647_v19, %v4647_v19  ;;  %v1301_v46 = vmul.f32 %v4701_v36, %v795_v56 }
  0xfd   : > { %v1303_v28 = vmul.f32 %v4708_v31, %v803_v59  ;;  %3326 = vmatpush1.bf16.msra.mxu0 %v3325_v38  ;;  %v3329_v39 = vpack.c.bf16 %v1296_v32, %v1292_v52  ;;  %v1300_v27 = vmul.f32 %v4715_v5, %v791_v14  ;;  %v1302_v55 = vmul.f32 %v4721_v44, %v799_v0  ;;  %v1866_v0 = vld [vmem:[#allocation8 + $0x10] sm:$0xff] }
  0xfe   : > { %3534 = vmatpush1.bf16.msra.mxu1 %v3533_v24  ;;  %v3537_v63 = vpack.c.bf16 %v1298_v26, %v1294_v9  ;;  %3328 = vmatprep.subr.bf16.mxu0 %v3327_v50  ;;  %v811_v54 = vrot.slane %v471_v11, %v4238_v48  ;;  %v819_v17 = vrot.slane %v471_v11, %v4260_v2  ;;  %v1874_v24 = vld [vmem:[#allocation8 + $0x50] sm:$0xff] }
  0xff   : > { %3536 = vmatprep.subr.bf16.mxu1 %v3535_v62  ;;  %v807_v30 = vrot.slane %v471_v11, %v4175_v4  ;;  %v815_v19 = vrot.slane %v471_v11, %v4268_v8  ;;  %v4773_v56 = vrot.slane %v504_v33, %v4195_v18  ;;  %v505_v29 = vcombine.high %v4624_v49, %v4630_v3 }
 0x100   : > { %v1305_v37 = vmul.f32 %v4654_v58, %v811_v54  ;;  %v1307_v59 = vmul.f32 %v4658_v43, %v819_v17  ;;  %v1309_v7 = vmul.f32 %v4671_v6, %v811_v54  ;;  %v1313_v14 = vmul.f32 %v4633_v51, %v811_v54 }
 0x101   : > { %v1304_v60 = vmul.f32 %v4662_v45, %v807_v30  ;;  %3330 = vmatpush1.bf16.msra.mxu0 %v3329_v39  ;;  %v1306_v12 = vmul.f32 %v4666_v23, %v815_v19  ;;  %v1311_v33 = vmul.f32 %v4676_v53, %v819_v17  ;;  %v1315_v35 = vmul.f32 %v4680_v15, %v819_v17 }
 0x102   : > { %3538 = vmatpush1.bf16.msra.mxu1 %v3537_v63  ;;  %v3331_v16 = vpack.c.bf16 %v1305_v37, %v1301_v46  ;;  %v3539_v47 = vpack.c.bf16 %v1307_v59, %v1303_v28  ;;  %v3335_v41 = vpack.c.bf16 %v1313_v14, %v1309_v7  ;;  %v1308_v1 = vmul.f32 %v4684_v40, %v807_v30  ;;  %v1873_v7 = vld [vmem:[#allocation8 + $0x48] sm:$0xff] }
 0x103   : > { %v3333_v22 = vpack.c.bf16 %v1304_v60, %v1300_v27  ;;  %v3541_v25 = vpack.c.bf16 %v1306_v12, %v1302_v55  ;;  %v1312_v61 = vmul.f32 %v4636_v21, %v807_v30  ;;  %v3543_v10 = vpack.c.bf16 %v1315_v35, %v1311_v33 }
 0x104   : > { %3332 = vmatprep.subr.bf16.mxu0 %v3331_v16  ;;  %3540 = vmatprep.subr.bf16.mxu1 %v3539_v47  ;;  %v1310_v42 = vmul.f32 %v4689_v13, %v815_v19  ;;  %v1314_v38 = vmul.f32 %v4694_v57, %v815_v19  ;;  %v827_v20 = vrot.slane %v4773_v56, %v4238_v48 }
 0x105   : > { %2479 = vmatmul.mubr.f32.vlgmr.msra.gmra.mrb[0].mxu0 %v1866_v0  ;;  %2835 = vmatmul.mubr.f32.vlgmr.msra.gmra.mrb[0].mxu1 %v1866_v0  ;;  %v3337_v50 = vpack.c.bf16 %v1312_v61, %v1308_v1  ;;  %v1317_v52 = vmul.f32 %v4701_v36, %v811_v54  ;;  %v835_v9 = vrot.slane %v4773_v56, %v4260_v2 }
 0x106   : > { %3334 = vmatpush1.bf16.msra.mxu0 %v3333_v22  ;;  %3542 = vmatpush1.bf16.msra.mxu1 %v3541_v25  ;;  %v3545_v32 = vpack.c.bf16 %v1314_v38, %v1310_v42  ;;  %v1319_v26 = vmul.f32 %v4708_v31, %v819_v17  ;;  %v1321_v62 = vmul.f32 %v4654_v58, %v827_v20  ;;  %v1881_v38 = vld [vmem:[#allocation8 + $0x88] sm:$0xff] }
 0x107   : > { %3336 = vmatprep.subr.bf16.mxu0 %v3335_v41  ;;  %3544 = vmatprep.subr.bf16.mxu1 %v3543_v10  ;;  %v823_v11 = vrot.slane %v4773_v56, %v4175_v4  ;;  %v1316_v46 = vmul.f32 %v4715_v5, %v807_v30  ;;  %v1323_v28 = vmul.f32 %v4658_v43, %v835_v9 }
 0x108   : > { %v831_v39 = vrot.slane %v4773_v56, %v4268_v8  ;;  %v1318_v63 = vmul.f32 %v4721_v44, %v815_v19  ;;  %v1325_v27 = vmul.f32 %v4671_v6, %v827_v20  ;;  %2484 = vmatprep.mubr.f32.mxu0 %v1874_v24  ;;  %v3339_v54 = vpack.c.bf16 %v1321_v62, %v1317_v52 }
 0x109   : > { %v1320_v17 = vmul.f32 %v4662_v45, %v823_v11  ;;  %v1329_v55 = vmul.f32 %v4633_v51, %v827_v20  ;;  %v1327_v37 = vmul.f32 %v4676_v53, %v835_v9  ;;  %2840 = vmatprep.mubr.f32.mxu1 %v1874_v24  ;;  %v3547_v30 = vpack.c.bf16 %v1323_v28, %v1319_v26 }
 0x10a   : > { %3338 = vmatpush1.bf16.msra.mxu0 %v3337_v50  ;;  %3546 = vmatpush1.bf16.msra.mxu1 %v3545_v32  ;;  %v1322_v59 = vmul.f32 %v4666_v23, %v831_v39  ;;  %v1331_v60 = vmul.f32 %v4680_v15, %v835_v9  ;;  %v1324_v14 = vmul.f32 %v4684_v40, %v823_v11 }
 0x10b   : > { %3340 = vmatprep.subr.bf16.mxu0 %v3339_v54  ;;  %v3341_v19 = vpack.c.bf16 %v1320_v17, %v1316_v46  ;;  %v3343_v12 = vpack.c.bf16 %v1329_v55, %v1325_v27  ;;  %v1328_v33 = vmul.f32 %v4636_v21, %v823_v11  ;;  %3548 = vmatprep.subr.bf16.mxu1 %v3547_v30 }
 0x10c   : > { %v3549_v16 = vpack.c.bf16 %v1322_v59, %v1318_v63  ;;  %v3551_v47 = vpack.c.bf16 %v1331_v60, %v1327_v37  ;;  %v1326_v0 = vmul.f32 %v4689_v13, %v831_v39  ;;  %v1330_v22 = vmul.f32 %v4694_v57, %v831_v39  ;;  %2485 = vmatmul.mubr.f32.gmra.mrb[2].mxu0 %v1873_v7 }
 0x10d   : > { %v3345_v35 = vpack.c.bf16 %v1328_v33, %v1324_v14  ;;  %v528_v25 = vrot.slane %v505_v29, %v4195_v18  ;;  %v1333_v41 = vmul.f32 %v4701_v36, %v827_v20  ;;  %v1335_v1 = vmul.f32 %v4708_v31, %v835_v9  ;;  %2841 = vmatmul.mubr.f32.gmra.mrb[2].mxu1 %v1873_v7  ;;  %v1888_v33 = vld [vmem:[#allocation8 + $0xc0] sm:$0xff] }
 0x10e   : > { %3342 = vmatpush1.bf16.msra.mxu0 %v3341_v19  ;;  %3550 = vmatpush1.bf16.msra.mxu1 %v3549_v16  ;;  %v3553_v61 = vpack.c.bf16 %v1330_v22, %v1326_v0  ;;  %v1332_v10 = vmul.f32 %v4715_v5, %v823_v11  ;;  %v1334_v42 = vmul.f32 %v4721_v44, %v831_v39  ;;  %v1880_v11 = vld [vmem:[#allocation8 + $0x80] sm:$0xff] }
 0x10f   : > { %3344 = vmatprep.subr.bf16.mxu0 %v3343_v12  ;;  %3552 = vmatprep.subr.bf16.mxu1 %v3551_v47  ;;  %v843_v50 = vrot.slane %v528_v25, %v4238_v48  ;;  %v851_v49 = vrot.slane %v528_v25, %v4260_v2  ;;  %v839_v3 = vrot.slane %v528_v25, %v4175_v4 }
 0x110   : > { %v847_v29 = vrot.slane %v528_v25, %v4268_v8  ;;  %v536_v20 = vcombine.high %v4773_v56, %v4773_v56  ;;  %v4827_v52 = vcombine.high %v528_v25, %v528_v25  ;;  %v475_v24 = vcombine.high %v4694_v57, %v4680_v15  ;;  %2490 = vmatprep.mubr.f32.mxu0 %v1881_v38 }
 0x111   : > { %v1337_v32 = vmul.f32 %v4654_v58, %v843_v50  ;;  %v1339_v9 = vmul.f32 %v4658_v43, %v851_v49  ;;  %v1336_v26 = vmul.f32 %v4662_v45, %v839_v3  ;;  %v1341_v62 = vmul.f32 %v4671_v6, %v843_v50  ;;  %2846 = vmatprep.mubr.f32.mxu1 %v1881_v38 }
 0x112   : > { %3346 = vmatpush1.bf16.msra.mxu0 %v3345_v35  ;;  %3554 = vmatpush1.bf16.msra.mxu1 %v3553_v61  ;;  %v1338_v56 = vmul.f32 %v4666_v23, %v847_v29  ;;  %v1345_v46 = vmul.f32 %v4633_v51, %v843_v50  ;;  %v1343_v28 = vmul.f32 %v4676_v53, %v851_v49 }
 0x113   : > { %v3347_v39 = vpack.c.bf16 %v1337_v32, %v1333_v41  ;;  %v3555_v63 = vpack.c.bf16 %v1339_v9, %v1335_v1  ;;  %v3349_v27 = vpack.c.bf16 %v1336_v26, %v1332_v10  ;;  %v1347_v54 = vmul.f32 %v4680_v15, %v851_v49  ;;  %2491 = vmatmul.mubr.f32.gmra.mrb[4].mxu0 %v1880_v11 }
 0x114   : > { %v3557_v17 = vpack.c.bf16 %v1338_v56, %v1334_v42  ;;  %v3351_v55 = vpack.c.bf16 %v1345_v46, %v1341_v62  ;;  %v1340_v37 = vmul.f32 %v4684_v40, %v839_v3  ;;  %v1344_v30 = vmul.f32 %v4636_v21, %v839_v3  ;;  %2847 = vmatmul.mubr.f32.gmra.mrb[4].mxu1 %v1880_v11 }
 0x115   : > { %3348 = vmatprep.subr.bf16.mxu0 %v3347_v39  ;;  %3556 = vmatprep.subr.bf16.mxu1 %v3555_v63  ;;  %v3559_v59 = vpack.c.bf16 %v1347_v54, %v1343_v28  ;;  %v1342_v60 = vmul.f32 %v4689_v13, %v847_v29  ;;  %v1346_v7 = vmul.f32 %v4694_v57, %v847_v29  ;;  %v1887_v63 = vld [vmem:[#allocation8 + $0xb8] sm:$0xff] }
 0x116   : > { %3350 = vmatpush1.bf16.msra.mxu0 %v3349_v27  ;;  %3558 = vmatpush1.bf16.msra.mxu1 %v3557_v17  ;;  %v3353_v19 = vpack.c.bf16 %v1344_v30, %v1340_v37  ;;  %v859_v12 = vrot.slane %v536_v20, %v4238_v48  ;;  %v1349_v14 = vmul.f32 %v4701_v36, %v843_v50 }
 0x117   : > { %3352 = vmatprep.subr.bf16.mxu0 %v3351_v55  ;;  %3560 = vmatprep.subr.bf16.mxu1 %v3559_v59  ;;  %v3561_v16 = vpack.c.bf16 %v1346_v7, %v1342_v60  ;;  %v867_v47 = vrot.slane %v536_v20, %v4260_v2  ;;  %v1351_v0 = vmul.f32 %v4708_v31, %v851_v49 }
 0x118   : > { %v1353_v22 = vmul.f32 %v4654_v58, %v859_v12  ;;  %v855_v35 = vrot.slane %v536_v20, %v4175_v4  ;;  %v1348_v25 = vmul.f32 %v4715_v5, %v839_v3  ;;  %v863_v41 = vrot.slane %v536_v20, %v4268_v8  ;;  %2496 = vmatprep.mubr.f32.mxu0 %v1888_v33 }
 0x119   : > { %v1355_v1 = vmul.f32 %v4658_v43, %v867_v47  ;;  %v1350_v61 = vmul.f32 %v4721_v44, %v847_v29  ;;  %v1357_v10 = vmul.f32 %v4671_v6, %v859_v12  ;;  %v1361_v42 = vmul.f32 %v4633_v51, %v859_v12  ;;  %2852 = vmatprep.mubr.f32.mxu1 %v1888_v33 }
 0x11a   : > { %3354 = vmatpush1.bf16.msra.mxu0 %v3353_v19  ;;  %3562 = vmatpush1.bf16.msra.mxu1 %v3561_v16  ;;  %v3355_v38 = vpack.c.bf16 %v1353_v22, %v1349_v14  ;;  %v1352_v50 = vmul.f32 %v4662_v45, %v855_v35  ;;  %v1354_v49 = vmul.f32 %v4666_v23, %v863_v41 }
 0x11b   : > { %v3563_v3 = vpack.c.bf16 %v1355_v1, %v1351_v0  ;;  %v3359_v32 = vpack.c.bf16 %v1361_v42, %v1357_v10  ;;  %v1359_v20 = vmul.f32 %v4676_v53, %v867_v47  ;;  %v1363_v9 = vmul.f32 %v4680_v15, %v867_v47  ;;  %2497 = vmatmul.mubr.f32.gmra.mrb[6].mxu0 %v1887_v63 }
 0x11c   : > { %3356 = vmatprep.subr.bf16.mxu0 %v3355_v38  ;;  %v3357_v29 = vpack.c.bf16 %v1352_v50, %v1348_v25  ;;  %v3565_v26 = vpack.c.bf16 %v1354_v49, %v1350_v61  ;;  %v1356_v62 = vmul.f32 %v4684_v40, %v855_v35  ;;  %v1360_v11 = vmul.f32 %v4636_v21, %v855_v35 }
 0x11d   : > { %3564 = vmatprep.subr.bf16.mxu1 %v3563_v3  ;;  %v3567_v56 = vpack.c.bf16 %v1363_v9, %v1359_v20  ;;  %v1358_v46 = vmul.f32 %v4689_v13, %v863_v41  ;;  %v1362_v28 = vmul.f32 %v4694_v57, %v863_v41  ;;  %v875_v39 = vrot.slane %v4827_v52, %v4238_v48 }
 0x11e   : > { %3358 = vmatpush1.bf16.msra.mxu0 %v3357_v29  ;;  %3566 = vmatpush1.bf16.msra.mxu1 %v3565_v26  ;;  %v3361_v27 = vpack.c.bf16 %v1360_v11, %v1356_v62  ;;  %v1365_v54 = vmul.f32 %v4701_v36, %v859_v12  ;;  %v883_v17 = vrot.slane %v4827_v52, %v4260_v2 }
 0x11f   : > { %3360 = vmatprep.subr.bf16.mxu0 %v3359_v32  ;;  %3568 = vmatprep.subr.bf16.mxu1 %v3567_v56  ;;  %v3569_v55 = vpack.c.bf16 %v1362_v28, %v1358_v46  ;;  %v1369_v37 = vmul.f32 %v4654_v58, %v875_v39  ;;  %v1367_v30 = vmul.f32 %v4708_v31, %v867_v47 }
 0x120   : > { %v1371_v59 = vmul.f32 %v4658_v43, %v883_v17  ;;  %v871_v60 = vrot.slane %v4827_v52, %v4175_v4  ;;  %v1364_v7 = vmul.f32 %v4715_v5, %v855_v35  ;;  %v879_v19 = vrot.slane %v4827_v52, %v4268_v8  ;;  %2853 = vmatmul.mubr.f32.gmra.mrb[6].mxu1 %v1887_v63  ;;  %v1869_v35 = vld [vmem:[#allocation8 + $0x28] sm:$0xff] }
 0x121   : > { %v3363_v12 = vpack.c.bf16 %v1369_v37, %v1365_v54  ;;  %v1366_v14 = vmul.f32 %v4721_v44, %v863_v41  ;;  %v1373_v33 = vmul.f32 %v4671_v6, %v875_v39  ;;  %v1377_v16 = vmul.f32 %v4633_v51, %v875_v39  ;;  %2567 = vmatprep.mubr.f32.mxu0 %v1869_v35 }
 0x122   : > { %3362 = vmatpush1.bf16.msra.mxu0 %v3361_v27  ;;  %3570 = vmatpush1.bf16.msra.mxu1 %v3569_v55  ;;  %v3571_v47 = vpack.c.bf16 %v1371_v59, %v1367_v30  ;;  %v1368_v0 = vmul.f32 %v4662_v45, %v871_v60  ;;  %v1370_v22 = vmul.f32 %v4666_v23, %v879_v19 }
 0x123   : > { %3364 = vmatprep.subr.bf16.mxu0 %v3363_v12  ;;  %v3367_v25 = vpack.c.bf16 %v1377_v16, %v1373_v33  ;;  %v1375_v52 = vmul.f32 %v4676_v53, %v883_v17  ;;  %v1379_v1 = vmul.f32 %v4680_v15, %v883_v17  ;;  %v1372_v41 = vmul.f32 %v4684_v40, %v871_v60 }
 0x124   : > { %3572 = vmatprep.subr.bf16.mxu1 %v3571_v47  ;;  %v3365_v61 = vpack.c.bf16 %v1368_v0, %v1364_v7  ;;  %v3573_v10 = vpack.c.bf16 %v1370_v22, %v1366_v14  ;;  %v1376_v42 = vmul.f32 %v4636_v21, %v871_v60  ;;  %v1374_v38 = vmul.f32 %v4689_v13, %v879_v19 }
 0x125   : > { %v3575_v50 = vpack.c.bf16 %v1379_v1, %v1375_v52  ;;  %v1378_v49 = vmul.f32 %v4694_v57, %v879_v19  ;;  %v489_v3 = vrot.slane %v473_v34, %v4195_v18  ;;  %v503_v32 = vrot.slane %v475_v24, %v4195_v18  ;;  %2923 = vmatprep.mubr.f32.mxu1 %v1869_v35 }
 0x126   : > { %3366 = vmatpush1.bf16.msra.mxu0 %v3365_v61  ;;  %3574 = vmatpush1.bf16.msra.mxu1 %v3573_v10  ;;  %v3369_v20 = vpack.c.bf16 %v1376_v42, %v1372_v41  ;;  %v1381_v26 = vmul.f32 %v4701_v36, %v875_v39  ;;  %v540_v34 = vcombine.low %v4715_v5, %v4701_v36 }
 0x127   : > { %3368 = vmatprep.subr.bf16.mxu0 %v3367_v25  ;;  %3576 = vmatprep.subr.bf16.mxu1 %v3575_v50  ;;  %v3577_v9 = vpack.c.bf16 %v1378_v49, %v1374_v38  ;;  %v506_v29 = vcombine.low %v489_v3, %v503_v32  ;;  %v507_v62 = vcombine.high %v489_v3, %v503_v32 }
 0x128   : > { %v541_v11 = vcombine.low %v4721_v44, %v4708_v31  ;;  %v1383_v56 = vmul.f32 %v4708_v31, %v883_v17  ;;  %v1380_v46 = vmul.f32 %v4715_v5, %v871_v60  ;;  %v1382_v28 = vmul.f32 %v4721_v44, %v879_v19 }
 0x129   : > { %v4901_v24 = vrot.slane %v506_v29, %v4195_v18  ;;  %v4907_v39 = vrot.slane %v507_v62, %v4195_v18  ;;  %v4910_v63 = vrot.slane %v540_v34, %v4195_v18 }
 0x12a   : > { %3370 = vmatpush1.bf16.msra.mxu0 %v3369_v20  ;;  %3578 = vmatpush1.bf16.msra.mxu1 %v3577_v9  ;;  %v4913_v27 = vrot.slane %v541_v11, %v4195_v18 }
 0x12b   : > { %v891_v54 = vrot.slane %v4901_v24, %v4238_v48  ;;  %v899_v17 = vrot.slane %v4901_v24, %v4260_v2  ;;  %v887_v55 = vrot.slane %v4901_v24, %v4175_v4  ;;  %v895_v37 = vrot.slane %v4901_v24, %v4268_v8 }
 0x12c   : > { %v907_v30 = vrot.slane %v4907_v39, %v4238_v48  ;;  %v915_v59 = vrot.slane %v4907_v39, %v4260_v2  ;;  %v903_v60 = vrot.slane %v4907_v39, %v4175_v4  ;;  %v4931_v7 = vrot.slane %v4907_v39, %v4268_v8 }
 0x12d   : > { %v1385_v19 = vmul.f32 %v4654_v58, %v891_v54  ;;  %v1387_v12 = vmul.f32 %v4658_v43, %v899_v17  ;;  %v1384_v14 = vmul.f32 %v4662_v45, %v887_v55  ;;  %v1386_v33 = vmul.f32 %v4666_v23, %v895_v37 }
 0x12e   : > { %v1389_v16 = vmul.f32 %v4671_v6, %v891_v54  ;;  %v1393_v47 = vmul.f32 %v4633_v51, %v891_v54  ;;  %v1391_v0 = vmul.f32 %v4676_v53, %v899_v17  ;;  %v1395_v22 = vmul.f32 %v4680_v15, %v899_v17 }
 0x12f   : > { %v3371_v35 = vpack.c.bf16 %v1385_v19, %v1381_v26  ;;  %v3579_v25 = vpack.c.bf16 %v1387_v12, %v1383_v56  ;;  %v3373_v52 = vpack.c.bf16 %v1384_v14, %v1380_v46  ;;  %v3581_v1 = vpack.c.bf16 %v1386_v33, %v1382_v28 }
 0x130   : > { %v3375_v41 = vpack.c.bf16 %v1393_v47, %v1389_v16  ;;  %v3583_v61 = vpack.c.bf16 %v1395_v22, %v1391_v0  ;;  %v1388_v10 = vmul.f32 %v4684_v40, %v887_v55  ;;  %v1392_v42 = vmul.f32 %v4636_v21, %v887_v55 }
 0x131   : > { %3372 = vmatprep.subr.bf16.mxu0 %v3371_v35  ;;  %3580 = vmatprep.subr.bf16.mxu1 %v3579_v25  ;;  %v1390_v38 = vmul.f32 %v4689_v13, %v895_v37  ;;  %v1394_v50 = vmul.f32 %v4694_v57, %v895_v37  ;;  %v1397_v49 = vmul.f32 %v4701_v36, %v891_v54 }
 0x132   : > { %3374 = vmatpush1.bf16.msra.mxu0 %v3373_v52  ;;  %3582 = vmatpush1.bf16.msra.mxu1 %v3581_v1  ;;  %v3377_v3 = vpack.c.bf16 %v1392_v42, %v1388_v10  ;;  %v1401_v32 = vmul.f32 %v4654_v58, %v907_v30  ;;  %v1399_v20 = vmul.f32 %v4708_v31, %v899_v17 }
 0x133   : > { %3376 = vmatprep.subr.bf16.mxu0 %v3375_v41  ;;  %3584 = vmatprep.subr.bf16.mxu1 %v3583_v61  ;;  %v3585_v9 = vpack.c.bf16 %v1394_v50, %v1390_v38  ;;  %v1403_v29 = vmul.f32 %v4658_v43, %v915_v59  ;;  %v1396_v26 = vmul.f32 %v4715_v5, %v887_v55 }
 0x134   : > { %v3379_v62 = vpack.c.bf16 %v1401_v32, %v1397_v49  ;;  %v1400_v34 = vmul.f32 %v4662_v45, %v903_v60  ;;  %v1398_v11 = vmul.f32 %v4721_v44, %v895_v37  ;;  %v1402_v56 = vmul.f32 %v4666_v23, %v4931_v7 }
 0x135   : > { %v3587_v46 = vpack.c.bf16 %v1403_v29, %v1399_v20  ;;  %v1405_v28 = vmul.f32 %v4671_v6, %v907_v30  ;;  %v1409_v54 = vmul.f32 %v4633_v51, %v907_v30  ;;  %v1407_v17 = vmul.f32 %v4676_v53, %v915_v59 }
 0x136   : > { %3378 = vmatpush1.bf16.msra.mxu0 %v3377_v3  ;;  %3586 = vmatpush1.bf16.msra.mxu1 %v3585_v9  ;;  %v3381_v19 = vpack.c.bf16 %v1400_v34, %v1396_v26  ;;  %v3589_v12 = vpack.c.bf16 %v1402_v56, %v1398_v11  ;;  %v1411_v55 = vmul.f32 %v4680_v15, %v915_v59 }
 0x137   : > { %3380 = vmatprep.subr.bf16.mxu0 %v3379_v62  ;;  %3588 = vmatprep.subr.bf16.mxu1 %v3587_v46  ;;  %v3383_v14 = vpack.c.bf16 %v1409_v54, %v1405_v28  ;;  %v1404_v37 = vmul.f32 %v4684_v40, %v903_v60  ;;  %v1408_v33 = vmul.f32 %v4636_v21, %v903_v60 }
 0x138   : > { %v3591_v16 = vpack.c.bf16 %v1411_v55, %v1407_v17  ;;  %v1406_v47 = vmul.f32 %v4689_v13, %v4931_v7  ;;  %v1410_v0 = vmul.f32 %v4694_v57, %v4931_v7  ;;  %v537_v22 = vcombine.high %v4901_v24, %v4901_v24 }
 0x139   : > { %v3385_v35 = vpack.c.bf16 %v1408_v33, %v1404_v37  ;;  %v1413_v25 = vmul.f32 %v4701_v36, %v907_v30  ;;  %v1415_v52 = vmul.f32 %v4708_v31, %v915_v59  ;;  %v1412_v1 = vmul.f32 %v4715_v5, %v903_v60 }
 0x13a   : > { %3382 = vmatpush1.bf16.msra.mxu0 %v3381_v19  ;;  %3590 = vmatpush1.bf16.msra.mxu1 %v3589_v12  ;;  %v3593_v41 = vpack.c.bf16 %v1410_v0, %v1406_v47  ;;  %v923_v61 = vrot.slane %v537_v22, %v4238_v48  ;;  %v931_v10 = vrot.slane %v537_v22, %v4260_v2 }
 0x13b   : > { %3384 = vmatprep.subr.bf16.mxu0 %v3383_v14  ;;  %3592 = vmatprep.subr.bf16.mxu1 %v3591_v16  ;;  %v919_v42 = vrot.slane %v537_v22, %v4175_v4  ;;  %v927_v24 = vrot.slane %v537_v22, %v4268_v8  ;;  %v1414_v30 = vmul.f32 %v4721_v44, %v4931_v7 }
 0x13c   : > { %v1417_v59 = vmul.f32 %v4654_v58, %v923_v61  ;;  %v1419_v60 = vmul.f32 %v4658_v43, %v931_v10  ;;  %v1421_v38 = vmul.f32 %v4671_v6, %v923_v61  ;;  %v1425_v50 = vmul.f32 %v4633_v51, %v923_v61 }
 0x13d   : > { %v1416_v49 = vmul.f32 %v4662_v45, %v919_v42  ;;  %v1418_v3 = vmul.f32 %v4666_v23, %v927_v24  ;;  %v1423_v32 = vmul.f32 %v4676_v53, %v931_v10  ;;  %v1427_v20 = vmul.f32 %v4680_v15, %v931_v10 }
 0x13e   : > { %3386 = vmatpush1.bf16.msra.mxu0 %v3385_v35  ;;  %3594 = vmatpush1.bf16.msra.mxu1 %v3593_v41  ;;  %v3387_v9 = vpack.c.bf16 %v1417_v59, %v1413_v25  ;;  %v3595_v7 = vpack.c.bf16 %v1419_v60, %v1415_v52  ;;  %v3391_v29 = vpack.c.bf16 %v1425_v50, %v1421_v38 }
 0x13f   : > { %v3389_v26 = vpack.c.bf16 %v1416_v49, %v1412_v1  ;;  %v3597_v62 = vpack.c.bf16 %v1418_v3, %v1414_v30  ;;  %v3599_v34 = vpack.c.bf16 %v1427_v20, %v1423_v32  ;;  %v1420_v11 = vmul.f32 %v4684_v40, %v919_v42  ;;  %v1876_v3 = vld [vmem:[#allocation8 + $0x60] sm:$0xff] }
 0x140   : > { %3388 = vmatprep.subr.bf16.mxu0 %v3387_v9  ;;  %3596 = vmatprep.subr.bf16.mxu1 %v3595_v7  ;;  %v1424_v56 = vmul.f32 %v4636_v21, %v919_v42  ;;  %v1422_v46 = vmul.f32 %v4689_v13, %v927_v24  ;;  %v1426_v28 = vmul.f32 %v4694_v57, %v927_v24 }
 0x141   : > { %v539_v54 = vcombine.high %v4907_v39, %v4907_v39  ;;  %v1429_v17 = vmul.f32 %v4701_v36, %v923_v61  ;;  %v1431_v19 = vmul.f32 %v4708_v31, %v931_v10  ;;  %v1428_v14 = vmul.f32 %v4715_v5, %v919_v42 }
 0x142   : > { %3390 = vmatpush1.bf16.msra.mxu0 %v3389_v26  ;;  %3598 = vmatpush1.bf16.msra.mxu1 %v3597_v62  ;;  %v3393_v12 = vpack.c.bf16 %v1424_v56, %v1420_v11  ;;  %v3601_v55 = vpack.c.bf16 %v1426_v28, %v1422_v46  ;;  %v1430_v47 = vmul.f32 %v4721_v44, %v927_v24  ;;  %v1868_v24 = vld [vmem:[#allocation8 + $0x20] sm:$0xff] }
 0x143   : > { %3392 = vmatprep.subr.bf16.mxu0 %v3391_v29  ;;  %3600 = vmatprep.subr.bf16.mxu1 %v3599_v34  ;;  %v939_v37 = vrot.slane %v539_v54, %v4238_v48  ;;  %v947_v33 = vrot.slane %v539_v54, %v4260_v2  ;;  %v935_v16 = vrot.slane %v539_v54, %v4175_v4  ;;  %v1875_v29 = vld [vmem:[#allocation8 + $0x58] sm:$0xff] }
 0x144   : > { %v943_v39 = vrot.slane %v539_v54, %v4268_v8  ;;  %v556_v0 = vcombine.low %v4910_v63, %v4913_v27 }
 0x145   : > { %v1433_v22 = vmul.f32 %v4654_v58, %v939_v37  ;;  %v1435_v35 = vmul.f32 %v4658_v43, %v947_v33  ;;  %v1432_v25 = vmul.f32 %v4662_v45, %v935_v16  ;;  %v1437_v52 = vmul.f32 %v4671_v6, %v939_v37 }
 0x146   : > { %3394 = vmatpush1.bf16.msra.mxu0 %v3393_v12  ;;  %3602 = vmatpush1.bf16.msra.mxu1 %v3601_v55  ;;  %v1434_v1 = vmul.f32 %v4666_v23, %v943_v39  ;;  %v1441_v41 = vmul.f32 %v4633_v51, %v939_v37  ;;  %v1439_v61 = vmul.f32 %v4676_v53, %v947_v33 }
 0x147   : > { %v3395_v10 = vpack.c.bf16 %v1433_v22, %v1429_v17  ;;  %v3603_v42 = vpack.c.bf16 %v1435_v35, %v1431_v19  ;;  %v3397_v63 = vpack.c.bf16 %v1432_v25, %v1428_v14  ;;  %v1443_v27 = vmul.f32 %v4680_v15, %v947_v33  ;;  %v3769_v17 = vld [vmem:[%s4162_s28 + $0x48] sm:$0xff] }
 0x148   : > { %v3605_v30 = vpack.c.bf16 %v1434_v1, %v1430_v47  ;;  %v3399_v59 = vpack.c.bf16 %v1441_v41, %v1437_v52  ;;  %v1436_v60 = vmul.f32 %v4684_v40, %v935_v16  ;;  %v1440_v38 = vmul.f32 %v4636_v21, %v935_v16  ;;  %v1890_v47 = vld [vmem:[#allocation8 + $0xd0] sm:$0xff] }
 0x149   : > { %3396 = vmatprep.subr.bf16.mxu0 %v3395_v10  ;;  %3604 = vmatprep.subr.bf16.mxu1 %v3603_v42  ;;  %v3607_v50 = vpack.c.bf16 %v1443_v27, %v1439_v61  ;;  %v1438_v49 = vmul.f32 %v4689_v13, %v943_v39  ;;  %v1442_v51 = vmul.f32 %v4694_v57, %v943_v39  ;;  %v3944_v52 = vmov 0.0  }
 0x14a   : > { %2568 = vmatmul.mubr.f32.vlgmr.msra.gmra.mrb[0].mxu0 %v1868_v24  ;;  %2924 = vmatmul.mubr.f32.vlgmr.msra.gmra.mrb[0].mxu1 %v1868_v24  ;;  %v3401_v32 = vpack.c.bf16 %v1440_v38, %v1436_v60  ;;  %v563_v20 = vrot.slane %v556_v0, %v4195_v18  ;;  %v1445_v9 = vmul.f32 %v4701_v36, %v939_v37  ;;  %v1883_v18 = vld [vmem:[#allocation8 + $0x98] sm:$0xff] }
 0x14b   : > { %3398 = vmatpush1.bf16.msra.mxu0 %v3397_v63  ;;  %3606 = vmatpush1.bf16.msra.mxu1 %v3605_v30  ;;  %v3609_v7 = vpack.c.bf16 %v1442_v51, %v1438_v49  ;;  %v1447_v21 = vmul.f32 %v4708_v31, %v947_v33  ;;  %v1444_v26 = vmul.f32 %v4715_v5, %v935_v16 }
 0x14c   : > { %3400 = vmatprep.subr.bf16.mxu0 %v3399_v59  ;;  %3608 = vmatprep.subr.bf16.mxu1 %v3607_v50  ;;  %v955_v62 = vrot.slane %v563_v20, %v4238_v48  ;;  %v963_v34 = vrot.slane %v563_v20, %v4260_v2  ;;  %v951_v11 = vrot.slane %v563_v20, %v4175_v4 }
 0x14d   : > { %2573 = vmatprep.mubr.f32.mxu0 %v1876_v3  ;;  %2929 = vmatprep.mubr.f32.mxu1 %v1876_v3  ;;  %v959_v56 = vrot.slane %v563_v20, %v4268_v8  ;;  %v1446_v46 = vmul.f32 %v4721_v44, %v943_v39 }
 0x14e   : > { %2574 = vmatmul.mubr.f32.gmra.mrb[2].mxu0 %v1875_v29  ;;  %2930 = vmatmul.mubr.f32.gmra.mrb[2].mxu1 %v1875_v29  ;;  %v1449_v28 = vmul.f32 %v4654_v58, %v955_v62  ;;  %v1451_v54 = vmul.f32 %v4658_v43, %v963_v34  ;;  %v1448_v48 = vmul.f32 %v4662_v45, %v951_v11  ;;  %v1882_v58 = vld [vmem:[#allocation8 + $0x90] sm:$0xff] }
 0x14f   : > { %3402 = vmatpush1.bf16.msra.mxu0 %v3401_v32  ;;  %3610 = vmatpush1.bf16.msra.mxu1 %v3609_v7  ;;  %v1450_v2 = vmul.f32 %v4666_v23, %v959_v56  ;;  %v1453_v4 = vmul.f32 %v4671_v6, %v955_v62  ;;  %v1457_v19 = vmul.f32 %v3769_v17, %v955_v62  ;;  %v3770_v6 = vld [vmem:[%s4162_s28 + $0x40] sm:$0xff] }
 0x150   : > { %v3403_v8 = vpack.c.bf16 %v1449_v28, %v1445_v9  ;;  %v3611_v12 = vpack.c.bf16 %v1451_v54, %v1447_v21  ;;  %2579 = vmatprep.mubr.f32.mxu0 %v1883_v18  ;;  %v3405_v55 = vpack.c.bf16 %v1448_v48, %v1444_v26  ;;  %2935 = vmatprep.mubr.f32.mxu1 %v1883_v18 }
 0x151   : > { %v3613_v14 = vpack.c.bf16 %v1450_v2, %v1446_v46  ;;  %v3407_v37 = vpack.c.bf16 %v1457_v19, %v1453_v4  ;;  %v1455_v43 = vmul.f32 %v4676_v53, %v963_v34  ;;  %v1459_v45 = vmul.f32 %v4680_v15, %v963_v34  ;;  %v1889_v15 = vld [vmem:[#allocation8 + $0xc8] sm:$0xff] }
 0x152   : > { %3404 = vmatprep.subr.bf16.mxu0 %v3403_v8  ;;  %3612 = vmatprep.subr.bf16.mxu1 %v3611_v12  ;;  %v1452_v23 = vmul.f32 %v4684_v40, %v951_v11  ;;  %v1456_v33 = vmul.f32 %v3770_v6, %v951_v11  ;;  %v1454_v16 = vmul.f32 %v4689_v13, %v959_v56 }
 0x153   : > { %3406 = vmatpush1.bf16.msra.mxu0 %v3405_v55  ;;  %3614 = vmatpush1.bf16.msra.mxu1 %v3613_v14  ;;  %v3615_v39 = vpack.c.bf16 %v1459_v45, %v1455_v43  ;;  %v1458_v0 = vmul.f32 %v4694_v57, %v959_v56  ;;  %v1461_v35 = vmul.f32 %v4701_v36, %v955_v62  ;;  %v1870_v57 = vld [vmem:[#allocation8 + $0x30] sm:$0xff]  ;;  %v1877_v36 = vld [vmem:[#allocation8 + $0x68] sm:$0xff] }
 0x154   : > { %2580 = vmatmul.mubr.f32.gmra.mrb[4].mxu0 %v1882_v58  ;;  %2936 = vmatmul.mubr.f32.gmra.mrb[4].mxu1 %v1882_v58  ;;  %v3409_v22 = vpack.c.bf16 %v1456_v33, %v1452_v23  ;;  %v1463_v40 = vmul.f32 %v4708_v31, %v963_v34  ;;  %v1460_v13 = vmul.f32 %v4715_v5, %v951_v11  ;;  %v1884_v31 = vld [vmem:[#allocation8 + $0xa0] sm:$0xff]  ;;  %v1891_v5 = vld [vmem:[#allocation8 + $0xd8] sm:$0xff] }
 0x155   : > { %3408 = vmatprep.subr.bf16.mxu0 %v3407_v37  ;;  %3616 = vmatprep.subr.bf16.mxu1 %v3615_v39  ;;  %v3617_v53 = vpack.c.bf16 %v1458_v0, %v1454_v16  ;;  %v1462_v25 = vmul.f32 %v4721_v44, %v959_v56 }
 0x156   : > { %2585 = vmatprep.mubr.f32.mxu0 %v1890_v47  ;;  %2941 = vmatprep.mubr.f32.mxu1 %v1890_v47 }
 0x157   : > { %3410 = vmatpush1.bf16.msra.mxu0 %v3409_v22  ;;  %3618 = vmatpush1.bf16.msra.mxu1 %v3617_v53 }
 0x158   : > { %2586 = vmatmul.mubr.f32.gmra.mrb[6].mxu0 %v1889_v15  ;;  %2942 = vmatmul.mubr.f32.gmra.mrb[6].mxu1 %v1889_v15 }
 0x159   : > { %2608 = vmatprep.subr.mxu0 %v1461_v35  ;;  %2964 = vmatprep.subr.mxu1 %v1463_v40 }
 0x15a   : > { %2656 = vmatprep.mubr.f32.mxu0 %v3944_v52  ;;  %3012 = vmatprep.mubr.f32.mxu1 %v3944_v52 }
 0x15b   : > { %2609 = vmatpush1.msra.mxu0 %v1460_v13  ;;  %2965 = vmatpush1.msra.mxu1 %v1462_v25 }
 0x15c   : > { %3187 = vmatmul.mubr.msk.f32.vlgmr.msra.gmra.mrb[0].mxu0 %vm2312_vm0, %v1870_v57  ;;  %3191 = vmatmul.mubr.msk.f32.vlgmr.msra.gmra.mrb[0].mxu1 %vm2312_vm0, %v1870_v57 }
 0x15d   : > { %2662 = vmatprep.mubr.f32.mxu0 %v3944_v52  ;;  %3018 = vmatprep.mubr.f32.mxu1 %v3944_v52 }
 0x160   : > { %3188 = vmatmul.mubr.msk.f32.gmra.mrb[2].mxu0 %vm2312_vm0, %v1877_v36  ;;  %3192 = vmatmul.mubr.msk.f32.gmra.mrb[2].mxu1 %vm2312_vm0, %v1877_v36 }
 0x161   : > { %2668 = vmatprep.mubr.f32.mxu0 %v3944_v52  ;;  %3024 = vmatprep.mubr.f32.mxu1 %v3944_v52 }
 0x164   : > { %3189 = vmatmul.mubr.msk.f32.gmra.mrb[4].mxu0 %vm2312_vm0, %v1884_v31  ;;  %3193 = vmatmul.mubr.msk.f32.gmra.mrb[4].mxu1 %vm2312_vm0, %v1884_v31 }
 0x165   : > { %2674 = vmatprep.mubr.f32.mxu0 %v3944_v52  ;;  %3030 = vmatprep.mubr.f32.mxu1 %v3944_v52 }
 0x168   : > { %3190 = vmatmul.mubr.msk.f32.gmra.mrb[6].mxu0 %vm2312_vm0, %v1891_v5  ;;  %3194 = vmatmul.mubr.msk.f32.gmra.mrb[6].mxu1 %vm2312_vm0, %v1891_v5 }
 0x22f   : > { %v2658_v44 = vpop.f32.mrb[0].mxu0  ;;  %v3014_v1 = vpop.f32.mrb[0].mxu1 }
 0x230   : > { %3037 = vst [vmem:[%s5046_s18] sm:$0xff] %v2658_v44  ;;  %3039 = vst [vmem:[%s5046_s18 + $0x10] sm:$0xff] %v3014_v1  ;;  %v2660_v41 = vpop.f32.mrb[1].mxu0  ;;  %v3016_v61 = vpop.f32.mrb[1].mxu1 }
 0x231   : > { %3038 = vst [vmem:[%s5046_s18 + $0x8] sm:$0xff] %v2660_v41  ;;  %3040 = vst [vmem:[%s5046_s18 + $0x18] sm:$0xff] %v3016_v61 }
 0x233   : > { %v2664_v10 = vpop.f32.mrb[2].mxu0  ;;  %v3020_v42 = vpop.f32.mrb[2].mxu1 }
 0x234   : > { %3041 = vst [vmem:[%s5046_s18 + $0x20] sm:$0xff] %v2664_v10  ;;  %3043 = vst [vmem:[%s5046_s18 + $0x30] sm:$0xff] %v3020_v42  ;;  %v2666_v24 = vpop.f32.mrb[3].mxu0  ;;  %v3022_v63 = vpop.f32.mrb[3].mxu1 }
 0x235   : > { %3042 = vst [vmem:[%s5046_s18 + $0x28] sm:$0xff] %v2666_v24  ;;  %3044 = vst [vmem:[%s5046_s18 + $0x38] sm:$0xff] %v3022_v63 }
 0x237   : > { %v2670_v27 = vpop.f32.mrb[4].mxu0  ;;  %v3026_v30 = vpop.f32.mrb[4].mxu1 }
 0x238   : > { %3045 = vst [vmem:[%s5046_s18 + $0x40] sm:$0xff] %v2670_v27  ;;  %3047 = vst [vmem:[%s5046_s18 + $0x50] sm:$0xff] %v3026_v30  ;;  %v2672_v59 = vpop.f32.mrb[5].mxu0  ;;  %v3028_v60 = vpop.f32.mrb[5].mxu1 }
 0x239   : > { %3046 = vst [vmem:[%s5046_s18 + $0x48] sm:$0xff] %v2672_v59  ;;  %3048 = vst [vmem:[%s5046_s18 + $0x58] sm:$0xff] %v3028_v60 }
 0x23b   : > { %v2676_v38 = vpop.f32.mrb[6].mxu0  ;;  %v3032_v50 = vpop.f32.mrb[6].mxu1 }
 0x23c   : > { %3049 = vst [vmem:[%s5046_s18 + $0x60] sm:$0xff] %v2676_v38  ;;  %3051 = vst [vmem:[%s5046_s18 + $0x70] sm:$0xff] %v3032_v50  ;;  %v2678_v49 = vpop.f32.mrb[7].mxu0  ;;  %v3034_v51 = vpop.f32.mrb[7].mxu1 }
 0x23d   : > { %3050 = vst [vmem:[%s5046_s18 + $0x68] sm:$0xff] %v2678_v49  ;;  %3052 = vst [vmem:[%s5046_s18 + $0x78] sm:$0xff] %v3034_v51 }
 0x23e   : > { %3872 = shalt.err (!%p3869_p6)
}
 0x23f   : > { %s3873_s29 = scalar_lea.hbm %s5065_s7, 2048  ;;  %s3877_s20 = scalar_lea.hbm %s5118_s3, 4096 }
 0x240   : > { %p3874_p8 = scmp.ne.s32.totalorder %s5065_s7, %s3873_s29  ;;  %p3878_p4 = scmp.lt.u32.totalorder %s5065_s7, %s5118_s3 }
 0x241   : > { %p3879_p11 = scmp.lt.u32.totalorder %s3877_s20, %s3873_s29  ;;  %p3881_p3 = scmp.lt.u32.totalorder %s3873_s29, %s5065_s7 }
 0x242   : > { %p3875_p10 = pnand %p3874_p8, %p4060_p12 }
 0x243   : > { %p3880_p13 = por %p3879_p11, %p3878_p4 }
 0x244   : > { %p3876_p0 = pneg %p3875_p10 }
 0x245   : > { %p3882_p7 = por %p3881_p3, %p3880_p13 }
 0x247   : > { %p3883_p9 = pnand %p3882_p7, %p3876_p0 }
 0x249   : > { %3886 = shalt.err (!%p3883_p9)
}
 0x24a   : > { %s3946_s28 = smov 512   ;;  %s3947_s18 = smov 1024  }
 0x24b   : > { %s3948_s26 = smov 32  }
 0x24c   : > { %3675 = dma.vmem_to_hbm [thread:$0]  (%p4060_p12), %s5067_s6, 2048, %s5065_s7, %s3054_s16, %s3946_s28, %s3947_s18, %s3948_s26  }
 0x24d PF: > { %s3082_s5 = sand.u32 1, %s3921_s12   ;;  %p5135_p1 = scmp.ne.s32.totalorder %s5123_s19, 0 }
 0x24e   : > { %p5136_p5 = scmp.ge.s32.totalorder %s3933_s15, 2  ;;  %s3083_s8 = scalar_lea.sflag [#allocation5], %s3082_s5 }
 0x250   : > { %p3689_p2 = pnand %p5136_p5, %p5135_p1 }
 0x252   : > { %3916 = dma.done.wait (!%p3689_p2), %s3083_s8, 2048  }
 0x253   : > { %3918 = vsyncadd (!%p3689_p2), %s3083_s8, 4294965248  ;;  %p19_p6 = scmp.ge.s32.totalorder %s4025_s24, 4   ;;  %s5137_s12 = smov %s3925_s13 }
 0x254   : > { %s5138_s13 = smov %s3929_s14  ;;  %s5139_s14 = smov %s4056_s17 }
 0x255   : > { %s5140_s15 = smov %s4025_s24  ;;  %21 = sbr.rel (!%p19_p6) target bundleno = 7 (0x7), region = 94 }
 0x25c   :  { %3088 = vsyncpa [#allocation4], 1 }
 0x25d   :  { %3090 = vsyncpa [#allocation4 + $0x1], 1 }
 0x25e   :  { %3091 = vsyncpa [#allocation7], 1 }
 0x25f   :  { %3093 = vsyncpa [#allocation7 + $0x1], 1 }
 0x260   :  { %3094 = vsyncpa [#allocation5], 1 }
 0x261   :  { %3096 = vsyncpa [#allocation5 + $0x1], 1 }

</bundles_post_ra>
